<compile_context>
chip_gen: v7x
topology: tpu7x:2x2x1
jax: 0.10.0
libtpu: 0.0.40
codegen_flags: <defaults>
</compile_context>

<pallas_src>
import functools

import numpy as np
import jax
import jax.numpy as jnp
from jax.experimental import pallas as pl
from jax.experimental.pallas import tpu as pltpu

# ----------------------------- small synthetic dims -----------------------------
T_PH = 8        # number of phones in the utterance
F_ART = 62      # articulatory feature dim produced by the text frontend
H = 32          # encoder / decoder hidden dim
UTT = 16        # utterance (style) embedding dim (self.default_utterance_embedding)
N_LANG = 4      # language-embedding table size (self.lang_id)
MEL = 80        # mel channels (ToucanTTS output, HiFiGAN input)
UPS_PHONE = 2   # static stand-in for duration-based length regulation
T_MEL = T_PH * UPS_PHONE
HOP = 4         # total vocoder upsampling (2 x 2)
T_WAVE = T_MEL * HOP
LANES = 128     # lane-dense padding (variance head, wave output, halo scratch)
LRELU = 0.1

# zero-halo scratch: activations live in rows [HPAD, HPAD+T_MEL), halo rows stay 0
HPAD = 8
HALO_ROWS = HPAD + T_MEL + HPAD          # 32 rows x 128 lanes f32 = 16 KiB

# Vocoder stages in polyphase form (all at T_MEL rows, phases folded onto lanes):
#   (name, in_lanes, out_lanes_sliced, d_min, n_d_row_shifts, p_in, upsample_r, act)
_VOC_STAGES = (
    ("pre",  MEL, 32,    -3, 7, 1, 1, "lrelu"),   # Conv1d K=7, 80 -> 32
    ("up1",  32,  32,    -1, 3, 1, 2, "lrelu"),   # x2 up + Conv1d K=3, 32 -> 16 (2 phases)
    ("up2",  32,  32,    -1, 3, 2, 2, "lrelu"),   # x2 up + Conv1d K=3, 16 -> 8  (4 phases)
    ("post", 32,  LANES, -1, 3, 4, 1, "tanh"),    # Conv1d K=7, 8 -> 1 (4 phases, lane-padded)
)


# ----------------------------- weight-slab layout -----------------------------
def _slab_layout():
    """Single lane-dense (rows, 128) f32 slab holding every weight/bias; each item
    starts at an 8-row-aligned offset so all kernel-side slices are sublane-aligned."""
    items = [("enc_w", F_ART, H), ("enc_b", 1, H),
             ("var_w", H, LANES), ("var_b", 1, LANES),
             ("pitch_emb", 1, H), ("energy_emb", 1, H),
             ("dec_w", H, MEL), ("dec_b", 1, MEL)]
    for name, win, wsl, d_min, n_d, p_in, r, act in _VOC_STAGES:
        items.append((name + "_w", n_d * win, wsl))   # n_d blocks of (win, wsl)
        items.append((name + "_b", 1, wsl))
    layout, off = {}, 0
    for name, rows, cols in items:
        layout[name] = (off, rows, cols)
        off += -(-rows // 8) * 8                      # 8-row alignment
    return layout, off


_LAYOUT, _SLAB_ROWS = _slab_layout()
assert _SLAB_ROWS % 8 == 0


# ----------------------------- fused Pallas kernel -----------------------------
def _poly_stage(slab_ref, halo_ref, x, name, win, wout, d_min, n_d, act):
    """One polyphase-folded 'NN-upsample + same Conv1d' stage, all at T_MEL rows.

    x: (T_MEL, win) activation (None -> already staged into the halo scratch).
    Each tap is a static ref slice of the zero-halo scratch (row shift d) matmul'd
    against a host-presummed (win, wout) weight block from the slab.
    """
    w_off = _LAYOUT[name + "_w"][0]
    b_off = _LAYOUT[name + "_b"][0]
    if x is not None:
        halo_ref[HPAD:HPAD + T_MEL, :win] = x
    acc = jnp.zeros((T_MEL, wout), jnp.float32)
    for i in range(n_d):                                           # static unroll (<=7)
        r0 = HPAD + d_min + i
        acc = acc + jnp.dot(halo_ref[r0:r0 + T_MEL, :win],
                            slab_ref[w_off + i * win:w_off + (i + 1) * win, :wout],
                            preferred_element_type=jnp.float32)
    acc = acc + slab_ref[b_off:b_off + 1, :wout]
    if act == "lrelu":
        return jnp.where(acc > 0, acc, LRELU * acc)
    return jnp.tanh(acc)


def _toucan_kernel(scal_ref, phones_ref, slab_ref, wave_ref, var_ref, halo_ref):
    ds_ = scal_ref[0]    # duration_scaling_factor
    pvs = scal_ref[1]    # pitch_variance_scale
    evs = scal_ref[2]    # energy_variance_scale

    def sl(name):
        off, rows, cols = _LAYOUT[name]
        return slab_ref[off:off + rows, :cols]

    # --- phone2mel encoder (utterance + language conditioning pre-fused into bias) ---
    enc = jnp.tanh(jnp.dot(phones_ref[...], sl("enc_w"),
                           preferred_element_type=jnp.float32) + sl("enc_b"))   # (T_PH,H)

    # --- variance adaptor: lane 0 = log-duration, 1 = pitch, 2 = energy (lane-dense) ---
    varp = (jnp.dot(enc, sl("var_w"), preferred_element_type=jnp.float32)
            + sl("var_b"))                                                       # (T_PH,128)
    lane = jax.lax.broadcasted_iota(jnp.int32, varp.shape, 1)
    nz = varp != 0.0                                    # mirrors the torch nonzero mask
    cnt = jnp.maximum(jnp.sum(jnp.where(nz, 1.0, 0.0), axis=0, keepdims=True), 1.0)
    mean = jnp.sum(jnp.where(nz, varp, 0.0), axis=0, keepdims=True) / cnt
    lane_scale = jnp.where(lane == 1, pvs, jnp.where(lane == 2, evs, 1.0))
    scaled = jnp.where(nz, (varp - mean) * lane_scale + mean, varp)
    # durations = max(round(exp(log_dur)*scale), 1); clipped so the host int cast is safe
    durf = jnp.clip(jnp.exp(scaled) * ds_, 0.0, 1.0e6)
    dur = jnp.maximum(jnp.floor(durf + 0.5), 1.0)
    var_ref[...] = jnp.where(lane == 0, dur, scaled)    # full-width (lane-dense) store

    # pitch / energy as direct lane slices; embeddings are rank-1 VPU broadcasts
    pitch = scaled[:, 1:2]                                                       # (T_PH,1)
    energy = scaled[:, 2:3]
    hidden = enc + pitch * sl("pitch_emb") + energy * sl("energy_emb")           # (T_PH,H)

    # --- decoder to mel (phone rate) + static x2 length regulation into the halo ---
    # TODO(synk): real ToucanTTS length-regulates by the *predicted* durations
    # (data-dependent output length); a static x{UPS_PHONE} repeat stands in.
    mel_ph = (jnp.dot(hidden, sl("dec_w"), preferred_element_type=jnp.float32)
              + sl("dec_b"))                                                     # (T_PH,MEL)
    halo_ref[...] = jnp.zeros_like(halo_ref)            # zero halo rows once per call
    for i in range(T_PH):                                # static unroll: repeat each phone
        halo_ref[HPAD + i * UPS_PHONE:HPAD + (i + 1) * UPS_PHONE, :MEL] = (
            jnp.broadcast_to(mel_ph[i:i + 1, :], (UPS_PHONE, MEL)))

    # --- mel2wav: HiFiGAN-style stack, polyphase-folded, every stage at T_MEL rows ---
    h = None
    for name, win, wout, d_min, n_d, _p, _r, act in _VOC_STAGES:
        h = _poly_stage(slab_ref, halo_ref, h, name, win, wout, d_min, n_d, act)
    wave_ref[...] = h                                    # (T_MEL, 128) full-width store


_VMEM = functools.partial(pl.BlockSpec, memory_space=pltpu.MemorySpace.VMEM)
_SMEM = functools.partial(pl.BlockSpec, memory_space=pltpu.MemorySpace.SMEM)

_fused_forward = pl.pallas_call(
    _toucan_kernel,
    out_shape=(jax.ShapeDtypeStruct((T_MEL, LANES), jnp.float32),   # wave phases
               jax.ShapeDtypeStruct((T_PH, LANES), jnp.float32)),   # dur/pitch/energy
    in_specs=[_SMEM(), _VMEM(), _VMEM()],
    out_specs=(_VMEM(), _VMEM()),
    scratch_shapes=[pltpu.VMEM((HALO_ROWS, LANES), jnp.float32)],
)


# ----------------------------- parameters (deterministic) -----------------------------
def init_params(key):
    ks = jax.random.split(key, 12)

    def w(k, shape, scale=0.1):
        return scale * jax.random.normal(k, shape, jnp.float32)

    return dict(
        enc_w=w(ks[0], (F_ART, H)), enc_b=jnp.zeros((H,), jnp.float32),
        utt_w=w(ks[1], (UTT, H)),
        lang_table=w(ks[2], (N_LANG, H)),
        var_w=w(ks[3], (H, 3)), var_b=jnp.zeros((3,), jnp.float32),
        pitch_emb=w(ks[4], (1, H)), energy_emb=w(ks[5], (1, H)),
        dec_w=w(ks[6], (H, MEL)), dec_b=jnp.zeros((MEL,), jnp.float32),
        # PyTorch Conv1d layout (Cout, Cin, K); folded once in prepare()
        voc_pre_w=w(ks[7], (32, MEL, 7)), voc_pre_b=jnp.zeros((32,), jnp.float32),
        voc_up1_w=w(ks[8], (16, 32, 3)), voc_up1_b=jnp.zeros((16,), jnp.float32),
        voc_up2_w=w(ks[9], (8, 16, 3)), voc_up2_b=jnp.zeros((8,), jnp.float32),
        voc_post_w=w(ks[10], (1, 8, 7)), voc_post_b=jnp.zeros((1,), jnp.float32),
        default_utt_emb=w(ks[11], (UTT,)),
    )


def _polyphase(w, b, p_in, r, d_min, n_d):
    """Fold 'nearest-neighbour x r upsample + same Conv1d(K)' into row-shift weights.

    w: (Cout, Cin, K) PyTorch layout.  Returns (n_d * p_in*Cin, p_out*Cout) stacked
    blocks (block i <-> row shift d_min+i) and a (1, p_out*Cout) phase-tiled bias.
    """
    w = np.asarray(w, np.float32)
    b = np.asarray(b, np.float32)
    cout, cin, K = w.shape
    pad = (K - 1) // 2
    p_out = p_in * r
    blocks = np.zeros((n_d, p_in * cin, p_out * cout), np.float32)
    for q in range(p_out):
        for k in range(K):
            fu = (q + k - pad) // r            # logical input index offset (floor div)
            s = fu % p_in                      # input phase
            d = (fu - s) // p_in               # row shift
            assert d_min <= d < d_min + n_d, (d, d_min, n_d)
            blocks[d - d_min, s * cin:(s + 1) * cin, q * cout:(q + 1) * cout] += w[:, :, k].T
    return (blocks.reshape(n_d * p_in * cin, p_out * cout),
            np.tile(b, p_out).reshape(1, p_out * cout))


def prepare(params, lang_id=0):
    """One-time host-side prep: fused conditioning bias, lane-padded variance head,
    polyphase-folded vocoder weights, everything packed into ONE (rows,128) slab."""
    slab = np.zeros((_SLAB_ROWS, LANES), np.float32)

    def put(name, arr):
        off, rows, cols = _LAYOUT[name]
        arr = np.asarray(arr, np.float32)
        assert arr.shape[0] == rows and arr.shape[1] <= cols, (name, arr.shape, (rows, cols))
        slab[off:off + arr.shape[0], :arr.shape[1]] = arr

    utt_bias = np.asarray(params["default_utt_emb"]) @ np.asarray(params["utt_w"])
    enc_bias = (np.asarray(params["enc_b"]) + utt_bias
                + np.asarray(params["lang_table"])[lang_id]).reshape(1, H)

    put("enc_w", params["enc_w"])
    put("enc_b", enc_bias)
    put("var_w", np.asarray(params["var_w"]))                 # zero-padded to 128 lanes
    put("var_b", np.asarray(params["var_b"]).reshape(1, 3))
    put("pitch_emb", params["pitch_emb"])
    put("energy_emb", params["energy_emb"])
    put("dec_w", params["dec_w"])
    put("dec_b", np.asarray(params["dec_b"]).reshape(1, MEL))

    convs = dict(pre=(params["voc_pre_w"], params["voc_pre_b"]),
                 up1=(params["voc_up1_w"], params["voc_up1_b"]),
                 up2=(params["voc_up2_w"], params["voc_up2_b"]),
                 post=(params["voc_post_w"], params["voc_post_b"]))
    for name, win, wsl, d_min, n_d, p_in, r, _act in _VOC_STAGES:
        wblk, brow = _polyphase(*convs[name], p_in=p_in, r=r, d_min=d_min, n_d=n_d)
        put(name + "_w", wblk)                                # post_* zero-padded to 128
        put(name + "_b", brow)

    return jnp.asarray(slab)


# ----------------------------- forward pass -----------------------------
@jax.jit
def toucan_forward(slab, phones, duration_scaling_factor=1.0,
                   pitch_variance_scale=1.0, energy_variance_scale=1.0):
    """Equivalent of ToucanTTSInterface.forward(text) numeric path.

    phones: (T_PH, F_ART) articulatory vectors (stand-in for string_to_tensor(text)).
    Returns: wave (T_WAVE,), durations (T_PH,), pitch (T_PH,), energy (T_PH,)
    """
    scalars = jnp.array([duration_scaling_factor, pitch_variance_scale,
                         energy_variance_scale], jnp.float32)
    wave_ph, var_out = _fused_forward(scalars, phones, slab)
    # wave phases -> interleaved waveform (host-side slice+reshape, free in XLA)
    wave = wave_ph[:, :HOP].reshape(T_WAVE)
    durations = var_out[:, 0].astype(jnp.int32)
    pitch = var_out[:, 1]
    energy = var_out[:, 2]
    return wave, durations, pitch, energy


# ----------------------------- main -----------------------------
if __name__ == "__main__":
    key = jax.random.PRNGKey(0)
    pkey, phkey = jax.random.split(key)
    params = init_params(pkey)
    slab = prepare(params, lang_id=0)

    # stand-in for text2phone.string_to_tensor(text): (T_PH, 62) articulatory vectors
    phones = jax.random.uniform(phkey, (T_PH, F_ART), jnp.float32)

    wave, durations, pitch, energy = toucan_forward(slab, phones)
    jax.block_until_ready((wave, durations, pitch, energy))

    assert wave.shape == (T_WAVE,) and wave.dtype == jnp.float32
    assert durations.shape == (T_PH,) and durations.dtype == jnp.int32
    assert pitch.shape == (T_PH,) and energy.shape == (T_PH,)
    assert bool(jnp.all(jnp.isfinite(wave)))
    assert bool(jnp.all(durations >= 1))
    print("KERNEL_OK")
</pallas_src>

<mosaic_0001>
module attributes {stable_mosaic.version = 11 : i64} {
  func.func @_toucan_kernel(%arg0: memref<3xf32, #tpu.memory_space<smem>>, %arg1: memref<8x62xf32, #tpu.memory_space<vmem>>, %arg2: memref<1048x128xf32, #tpu.memory_space<vmem>>, %arg3: memref<16x128xf32, #tpu.memory_space<vmem>>, %arg4: memref<8x128xf32, #tpu.memory_space<vmem>>, %arg5: memref<32x128xf32, #tpu.memory_space<vmem>>) attributes {dimension_semantics = [], scalar_prefetch = 0 : i64, scratch_operands = 1 : i64, tpu.core_type = #tpu.core_type<tc>} {
    %c0 = arith.constant 0 : index
    %0 = memref.load %arg0[%c0] : memref<3xf32, #tpu.memory_space<smem>>
    %c1 = arith.constant 1 : index
    %1 = memref.load %arg0[%c1] : memref<3xf32, #tpu.memory_space<smem>>
    %c2 = arith.constant 2 : index
    %2 = memref.load %arg0[%c2] : memref<3xf32, #tpu.memory_space<smem>>
    %c0_0 = arith.constant 0 : index
    %c0_1 = arith.constant 0 : index
    %3 = vector.load %arg1[%c0_0, %c0_1] : memref<8x62xf32, #tpu.memory_space<vmem>>, vector<8x62xf32>
    %c0_2 = arith.constant 0 : index
    %c0_3 = arith.constant 0 : index
    %4 = vector.load %arg2[%c0_2, %c0_3] : memref<1048x128xf32, #tpu.memory_space<vmem>>, vector<62x32xf32>
    %cst = arith.constant dense<0.000000e+00> : vector<8x32xf32>
    %5 = tpu.matmul %3, %4, %cst {dimension_numbers = #tpu.dot_dimension_numbers<[1], [0], [0], [1], [0, 0, 1, 1], [], []>} : vector<8x62xf32>, vector<62x32xf32>, vector<8x32xf32> -> vector<8x32xf32>
    %c64 = arith.constant 64 : index
    %c0_4 = arith.constant 0 : index
    %6 = vector.load %arg2[%c64, %c0_4] : memref<1048x128xf32, #tpu.memory_space<vmem>>, vector<1x32xf32>
    %7 = vector.broadcast %6 : vector<1x32xf32> to vector<8x32xf32>
    %8 = arith.addf %5, %7 : vector<8x32xf32>
    %9 = math.tanh %8 : vector<8x32xf32>
    %c72 = arith.constant 72 : index
    %c0_5 = arith.constant 0 : index
    %10 = vector.load %arg2[%c72, %c0_5] : memref<1048x128xf32, #tpu.memory_space<vmem>>, vector<32x128xf32>
    %cst_6 = arith.constant dense<0.000000e+00> : vector<8x128xf32>
    %11 = tpu.matmul %9, %10, %cst_6 {dimension_numbers = #tpu.dot_dimension_numbers<[1], [0], [0], [1], [0, 0, 1, 1], [], []>} : vector<8x32xf32>, vector<32x128xf32>, vector<8x128xf32> -> vector<8x128xf32>
    %c104 = arith.constant 104 : index
    %c0_7 = arith.constant 0 : index
    %12 = vector.load %arg2[%c104, %c0_7] : memref<1048x128xf32, #tpu.memory_space<vmem>>, vector<1x128xf32>
    %13 = vector.broadcast %12 : vector<1x128xf32> to vector<8x128xf32>
    %14 = arith.addf %11, %13 : vector<8x128xf32>
    %15 = tpu.iota {dimensions = array<i32: 1>} : vector<8x128xi32>
    %cst_8 = arith.constant 0.000000e+00 : f32
    %16 = vector.broadcast %cst_8 : f32 to vector<8x128xf32>
    %17 = arith.cmpf one, %14, %16 : vector<8x128xf32>
    %cst_9 = arith.constant 1.000000e+00 : f32
    %cst_10 = arith.constant 0.000000e+00 : f32
    %18 = vector.broadcast %cst_9 : f32 to vector<8x128xf32>
    %19 = vector.broadcast %cst_10 : f32 to vector<8x128xf32>
    %20 = arith.select %17, %18, %19 : vector<8x128xi1>, vector<8x128xf32>
    %cst_11 = arith.constant dense<0.000000e+00> : vector<128xf32>
    %21 = vector.multi_reduction <add>, %20, %cst_11 [0] : vector<8x128xf32> to vector<128xf32>
    %22 = vector.shape_cast %21 : vector<128xf32> to vector<1x128xf32>
    %cst_12 = arith.constant 1.000000e+00 : f32
    %23 = vector.broadcast %cst_12 : f32 to vector<1x128xf32>
    %24 = arith.maximumf %22, %23 : vector<1x128xf32>
    %cst_13 = arith.constant 0.000000e+00 : f32
    %25 = vector.broadcast %cst_13 : f32 to vector<8x128xf32>
    %26 = arith.select %17, %14, %25 : vector<8x128xi1>, vector<8x128xf32>
    %cst_14 = arith.constant dense<0.000000e+00> : vector<128xf32>
    %27 = vector.multi_reduction <add>, %26, %cst_14 [0] : vector<8x128xf32> to vector<128xf32>
    %28 = vector.shape_cast %27 : vector<128xf32> to vector<1x128xf32>
    %29 = arith.divf %28, %24 : vector<1x128xf32>
    %c1_i32 = arith.constant 1 : i32
    %30 = vector.broadcast %c1_i32 : i32 to vector<8x128xi32>
    %31 = arith.cmpi eq, %15, %30 : vector<8x128xi32>
    %c2_i32 = arith.constant 2 : i32
    %32 = vector.broadcast %c2_i32 : i32 to vector<8x128xi32>
    %33 = arith.cmpi eq, %15, %32 : vector<8x128xi32>
    %cst_15 = arith.constant 1.000000e+00 : f32
    %34 = vector.broadcast %2 : f32 to vector<8x128xf32>
    %35 = vector.broadcast %cst_15 : f32 to vector<8x128xf32>
    %36 = arith.select %33, %34, %35 : vector<8x128xi1>, vector<8x128xf32>
    %37 = vector.broadcast %1 : f32 to vector<8x128xf32>
    %38 = arith.select %31, %37, %36 : vector<8x128xi1>, vector<8x128xf32>
    %39 = vector.broadcast %29 : vector<1x128xf32> to vector<8x128xf32>
    %40 = arith.subf %14, %39 : vector<8x128xf32>
    %41 = arith.mulf %40, %38 : vector<8x128xf32>
    %42 = vector.broadcast %29 : vector<1x128xf32> to vector<8x128xf32>
    %43 = arith.addf %41, %42 : vector<8x128xf32>
    %44 = arith.select %17, %43, %14 : vector<8x128xi1>, vector<8x128xf32>
    %45 = math.exp %44 : vector<8x128xf32>
    %46 = vector.broadcast %0 : f32 to vector<8x128xf32>
    %47 = arith.mulf %45, %46 : vector<8x128xf32>
    %cst_16 = arith.constant 0.000000e+00 : f32
    %cst_17 = arith.constant 1.000000e+06 : f32
    %48 = vector.broadcast %cst_16 : f32 to vector<8x128xf32>
    %49 = arith.maximumf %48, %47 : vector<8x128xf32>
    %50 = vector.broadcast %cst_17 : f32 to vector<8x128xf32>
    %51 = arith.minimumf %50, %49 : vector<8x128xf32>
    %cst_18 = arith.constant 5.000000e-01 : f32
    %52 = vector.broadcast %cst_18 : f32 to vector<8x128xf32>
    %53 = arith.addf %51, %52 : vector<8x128xf32>
    %54 = math.floor %53 : vector<8x128xf32>
    %cst_19 = arith.constant 1.000000e+00 : f32
    %55 = vector.broadcast %cst_19 : f32 to vector<8x128xf32>
    %56 = arith.maximumf %54, %55 : vector<8x128xf32>
    %c0_i32 = arith.constant 0 : i32
    %57 = vector.broadcast %c0_i32 : i32 to vector<8x128xi32>
    %58 = arith.cmpi eq, %15, %57 : vector<8x128xi32>
    %59 = arith.select %58, %56, %44 : vector<8x128xi1>, vector<8x128xf32>
    %c0_20 = arith.constant 0 : index
    %c0_21 = arith.constant 0 : index
    %60 = vector.load %arg4[%c0_20, %c0_21] : memref<8x128xf32, #tpu.memory_space<vmem>>, vector<8x128xf32>
    tpu.vector_store %arg4[%c0_20, %c0_21], %59 {strides = array<i32>} : memref<8x128xf32, #tpu.memory_space<vmem>>, vector<8x128xf32>,
    %61 = vector.extract_strided_slice %44 {offsets = [0, 1], sizes = [8, 1], strides = [1, 1]} : vector<8x128xf32> to vector<8x1xf32>
    %62 = vector.extract_strided_slice %44 {offsets = [0, 2], sizes = [8, 1], strides = [1, 1]} : vector<8x128xf32> to vector<8x1xf32>
    %c112 = arith.constant 112 : index
    %c0_22 = arith.constant 0 : index
    %63 = vector.load %arg2[%c112, %c0_22] : memref<1048x128xf32, #tpu.memory_space<vmem>>, vector<1x32xf32>
    %64 = vector.broadcast %61 : vector<8x1xf32> to vector<8x32xf32>
    %65 = vector.broadcast %63 : vector<1x32xf32> to vector<8x32xf32>
    %66 = arith.mulf %64, %65 : vector<8x32xf32>
    %67 = arith.addf %9, %66 : vector<8x32xf32>
    %c120 = arith.constant 120 : index
    %c0_23 = arith.constant 0 : index
    %68 = vector.load %arg2[%c120, %c0_23] : memref<1048x128xf32, #tpu.memory_space<vmem>>, vector<1x32xf32>
    %69 = vector.broadcast %62 : vector<8x1xf32> to vector<8x32xf32>
    %70 = vector.broadcast %68 : vector<1x32xf32> to vector<8x32xf32>
    %71 = arith.mulf %69, %70 : vector<8x32xf32>
    %72 = arith.addf %67, %71 : vector<8x32xf32>
    %c128 = arith.constant 128 : index
    %c0_24 = arith.constant 0 : index
    %73 = vector.load %arg2[%c128, %c0_24] : memref<1048x128xf32, #tpu.memory_space<vmem>>, vector<32x80xf32>
    %cst_25 = arith.constant dense<0.000000e+00> : vector<8x80xf32>
    %74 = tpu.matmul %72, %73, %cst_25 {dimension_numbers = #tpu.dot_dimension_numbers<[1], [0], [0], [1], [0, 0, 1, 1], [], []>} : vector<8x32xf32>, vector<32x80xf32>, vector<8x80xf32> -> vector<8x80xf32>
    %c160 = arith.constant 160 : index
    %c0_26 = arith.constant 0 : index
    %75 = vector.load %arg2[%c160, %c0_26] : memref<1048x128xf32, #tpu.memory_space<vmem>>, vector<1x80xf32>
    %76 = vector.broadcast %75 : vector<1x80xf32> to vector<8x80xf32>
    %77 = arith.addf %74, %76 : vector<8x80xf32>
    %cst_27 = arith.constant 0.000000e+00 : f32
    %78 = vector.broadcast %cst_27 : f32 to vector<32x128xf32>
    %c0_28 = arith.constant 0 : index
    %c0_29 = arith.constant 0 : index
    %79 = vector.load %arg5[%c0_28, %c0_29] : memref<32x128xf32, #tpu.memory_space<vmem>>, vector<32x128xf32>
    tpu.vector_store %arg5[%c0_28, %c0_29], %78 {strides = array<i32>} : memref<32x128xf32, #tpu.memory_space<vmem>>, vector<32x128xf32>,
    %80 = vector.extract_strided_slice %77 {offsets = [0, 0], sizes = [1, 80], strides = [1, 1]} : vector<8x80xf32> to vector<1x80xf32>
    %81 = vector.shape_cast %80 : vector<1x80xf32> to vector<1x80xf32>
    %82 = vector.broadcast %81 : vector<1x80xf32> to vector<2x80xf32>
    %c8 = arith.constant 8 : index
    %c0_30 = arith.constant 0 : index
    %83 = vector.load %arg5[%c8, %c0_30] : memref<32x128xf32, #tpu.memory_space<vmem>>, vector<2x80xf32>
    tpu.vector_store %arg5[%c8, %c0_30], %82 {strides = array<i32>} : memref<32x128xf32, #tpu.memory_space<vmem>>, vector<2x80xf32>,
    %84 = vector.extract_strided_slice %77 {offsets = [1, 0], sizes = [1, 80], strides = [1, 1]} : vector<8x80xf32> to vector<1x80xf32>
    %85 = vector.shape_cast %84 : vector<1x80xf32> to vector<1x80xf32>
    %86 = vector.broadcast %85 : vector<1x80xf32> to vector<2x80xf32>
    %c10 = arith.constant 10 : index
    %c0_31 = arith.constant 0 : index
    %87 = vector.load %arg5[%c10, %c0_31] : memref<32x128xf32, #tpu.memory_space<vmem>>, vector<2x80xf32>
    tpu.vector_store %arg5[%c10, %c0_31], %86 {strides = array<i32>} : memref<32x128xf32, #tpu.memory_space<vmem>>, vector<2x80xf32>,
    %88 = vector.extract_strided_slice %77 {offsets = [2, 0], sizes = [1, 80], strides = [1, 1]} : vector<8x80xf32> to vector<1x80xf32>
    %89 = vector.shape_cast %88 : vector<1x80xf32> to vector<1x80xf32>
    %90 = vector.broadcast %89 : vector<1x80xf32> to vector<2x80xf32>
    %c12 = arith.constant 12 : index
    %c0_32 = arith.constant 0 : index
    %91 = vector.load %arg5[%c12, %c0_32] : memref<32x128xf32, #tpu.memory_space<vmem>>, vector<2x80xf32>
    tpu.vector_store %arg5[%c12, %c0_32], %90 {strides = array<i32>} : memref<32x128xf32, #tpu.memory_space<vmem>>, vector<2x80xf32>,
    %92 = vector.extract_strided_slice %77 {offsets = [3, 0], sizes = [1, 80], strides = [1, 1]} : vector<8x80xf32> to vector<1x80xf32>
    %93 = vector.shape_cast %92 : vector<1x80xf32> to vector<1x80xf32>
    %94 = vector.broadcast %93 : vector<1x80xf32> to vector<2x80xf32>
    %c14 = arith.constant 14 : index
    %c0_33 = arith.constant 0 : index
    %95 = vector.load %arg5[%c14, %c0_33] : memref<32x128xf32, #tpu.memory_space<vmem>>, vector<2x80xf32>
    tpu.vector_store %arg5[%c14, %c0_33], %94 {strides = array<i32>} : memref<32x128xf32, #tpu.memory_space<vmem>>, vector<2x80xf32>,
    %96 = vector.extract_strided_slice %77 {offsets = [4, 0], sizes = [1, 80], strides = [1, 1]} : vector<8x80xf32> to vector<1x80xf32>
    %97 = vector.shape_cast %96 : vector<1x80xf32> to vector<1x80xf32>
    %98 = vector.broadcast %97 : vector<1x80xf32> to vector<2x80xf32>
    %c16 = arith.constant 16 : index
    %c0_34 = arith.constant 0 : index
    %99 = vector.load %arg5[%c16, %c0_34] : memref<32x128xf32, #tpu.memory_space<vmem>>, vector<2x80xf32>
    tpu.vector_store %arg5[%c16, %c0_34], %98 {strides = array<i32>} : memref<32x128xf32, #tpu.memory_space<vmem>>, vector<2x80xf32>,
    %100 = vector.extract_strided_slice %77 {offsets = [5, 0], sizes = [1, 80], strides = [1, 1]} : vector<8x80xf32> to vector<1x80xf32>
    %101 = vector.shape_cast %100 : vector<1x80xf32> to vector<1x80xf32>
    %102 = vector.broadcast %101 : vector<1x80xf32> to vector<2x80xf32>
    %c18 = arith.constant 18 : index
    %c0_35 = arith.constant 0 : index
    %103 = vector.load %arg5[%c18, %c0_35] : memref<32x128xf32, #tpu.memory_space<vmem>>, vector<2x80xf32>
    tpu.vector_store %arg5[%c18, %c0_35], %102 {strides = array<i32>} : memref<32x128xf32, #tpu.memory_space<vmem>>, vector<2x80xf32>,
    %104 = vector.extract_strided_slice %77 {offsets = [6, 0], sizes = [1, 80], strides = [1, 1]} : vector<8x80xf32> to vector<1x80xf32>
    %105 = vector.shape_cast %104 : vector<1x80xf32> to vector<1x80xf32>
    %106 = vector.broadcast %105 : vector<1x80xf32> to vector<2x80xf32>
    %c20 = arith.constant 20 : index
    %c0_36 = arith.constant 0 : index
    %107 = vector.load %arg5[%c20, %c0_36] : memref<32x128xf32, #tpu.memory_space<vmem>>, vector<2x80xf32>
    tpu.vector_store %arg5[%c20, %c0_36], %106 {strides = array<i32>} : memref<32x128xf32, #tpu.memory_space<vmem>>, vector<2x80xf32>,
    %108 = vector.extract_strided_slice %77 {offsets = [7, 0], sizes = [1, 80], strides = [1, 1]} : vector<8x80xf32> to vector<1x80xf32>
    %109 = vector.shape_cast %108 : vector<1x80xf32> to vector<1x80xf32>
    %110 = vector.broadcast %109 : vector<1x80xf32> to vector<2x80xf32>
    %c22 = arith.constant 22 : index
    %c0_37 = arith.constant 0 : index
    %111 = vector.load %arg5[%c22, %c0_37] : memref<32x128xf32, #tpu.memory_space<vmem>>, vector<2x80xf32>
    tpu.vector_store %arg5[%c22, %c0_37], %110 {strides = array<i32>} : memref<32x128xf32, #tpu.memory_space<vmem>>, vector<2x80xf32>,
    %cst_38 = arith.constant 0.000000e+00 : f32
    %112 = vector.broadcast %cst_38 : f32 to vector<16x32xf32>
    %c5 = arith.constant 5 : index
    %c0_39 = arith.constant 0 : index
    %113 = vector.load %arg5[%c5, %c0_39] : memref<32x128xf32, #tpu.memory_space<vmem>>, vector<16x80xf32>
    %c168 = arith.constant 168 : index
    %c0_40 = arith.constant 0 : index
    %114 = vector.load %arg2[%c168, %c0_40] : memref<1048x128xf32, #tpu.memory_space<vmem>>, vector<80x32xf32>
    %cst_41 = arith.constant dense<0.000000e+00> : vector<16x32xf32>
    %115 = tpu.matmul %113, %114, %cst_41 {dimension_numbers = #tpu.dot_dimension_numbers<[1], [0], [0], [1], [0, 0, 1, 1], [], []>} : vector<16x80xf32>, vector<80x32xf32>, vector<16x32xf32> -> vector<16x32xf32>
    %116 = arith.addf %112, %115 : vector<16x32xf32>
    %c6 = arith.constant 6 : index
    %c0_42 = arith.constant 0 : index
    %117 = vector.load %arg5[%c6, %c0_42] : memref<32x128xf32, #tpu.memory_space<vmem>>, vector<16x80xf32>
    %c248 = arith.constant 248 : index
    %c0_43 = arith.constant 0 : index
    %118 = vector.load %arg2[%c248, %c0_43] : memref<1048x128xf32, #tpu.memory_space<vmem>>, vector<80x32xf32>
    %cst_44 = arith.constant dense<0.000000e+00> : vector<16x32xf32>
    %119 = tpu.matmul %117, %118, %cst_44 {dimension_numbers = #tpu.dot_dimension_numbers<[1], [0], [0], [1], [0, 0, 1, 1], [], []>} : vector<16x80xf32>, vector<80x32xf32>, vector<16x32xf32> -> vector<16x32xf32>
    %120 = arith.addf %116, %119 : vector<16x32xf32>
    %c7 = arith.constant 7 : index
    %c0_45 = arith.constant 0 : index
    %121 = vector.load %arg5[%c7, %c0_45] : memref<32x128xf32, #tpu.memory_space<vmem>>, vector<16x80xf32>
    %c328 = arith.constant 328 : index
    %c0_46 = arith.constant 0 : index
    %122 = vector.load %arg2[%c328, %c0_46] : memref<1048x128xf32, #tpu.memory_space<vmem>>, vector<80x32xf32>
    %cst_47 = arith.constant dense<0.000000e+00> : vector<16x32xf32>
    %123 = tpu.matmul %121, %122, %cst_47 {dimension_numbers = #tpu.dot_dimension_numbers<[1], [0], [0], [1], [0, 0, 1, 1], [], []>} : vector<16x80xf32>, vector<80x32xf32>, vector<16x32xf32> -> vector<16x32xf32>
    %124 = arith.addf %120, %123 : vector<16x32xf32>
    %c8_48 = arith.constant 8 : index
    %c0_49 = arith.constant 0 : index
    %125 = vector.load %arg5[%c8_48, %c0_49] : memref<32x128xf32, #tpu.memory_space<vmem>>, vector<16x80xf32>
    %c408 = arith.constant 408 : index
    %c0_50 = arith.constant 0 : index
    %126 = vector.load %arg2[%c408, %c0_50] : memref<1048x128xf32, #tpu.memory_space<vmem>>, vector<80x32xf32>
    %cst_51 = arith.constant dense<0.000000e+00> : vector<16x32xf32>
    %127 = tpu.matmul %125, %126, %cst_51 {dimension_numbers = #tpu.dot_dimension_numbers<[1], [0], [0], [1], [0, 0, 1, 1], [], []>} : vector<16x80xf32>, vector<80x32xf32>, vector<16x32xf32> -> vector<16x32xf32>
    %128 = arith.addf %124, %127 : vector<16x32xf32>
    %c9 = arith.constant 9 : index
    %c0_52 = arith.constant 0 : index
    %129 = vector.load %arg5[%c9, %c0_52] : memref<32x128xf32, #tpu.memory_space<vmem>>, vector<16x80xf32>
    %c488 = arith.constant 488 : index
    %c0_53 = arith.constant 0 : index
    %130 = vector.load %arg2[%c488, %c0_53] : memref<1048x128xf32, #tpu.memory_space<vmem>>, vector<80x32xf32>
    %cst_54 = arith.constant dense<0.000000e+00> : vector<16x32xf32>
    %131 = tpu.matmul %129, %130, %cst_54 {dimension_numbers = #tpu.dot_dimension_numbers<[1], [0], [0], [1], [0, 0, 1, 1], [], []>} : vector<16x80xf32>, vector<80x32xf32>, vector<16x32xf32> -> vector<16x32xf32>
    %132 = arith.addf %128, %131 : vector<16x32xf32>
    %c10_55 = arith.constant 10 : index
    %c0_56 = arith.constant 0 : index
    %133 = vector.load %arg5[%c10_55, %c0_56] : memref<32x128xf32, #tpu.memory_space<vmem>>, vector<16x80xf32>
    %c568 = arith.constant 568 : index
    %c0_57 = arith.constant 0 : index
    %134 = vector.load %arg2[%c568, %c0_57] : memref<1048x128xf32, #tpu.memory_space<vmem>>, vector<80x32xf32>
    %cst_58 = arith.constant dense<0.000000e+00> : vector<16x32xf32>
    %135 = tpu.matmul %133, %134, %cst_58 {dimension_numbers = #tpu.dot_dimension_numbers<[1], [0], [0], [1], [0, 0, 1, 1], [], []>} : vector<16x80xf32>, vector<80x32xf32>, vector<16x32xf32> -> vector<16x32xf32>
    %136 = arith.addf %132, %135 : vector<16x32xf32>
    %c11 = arith.constant 11 : index
    %c0_59 = arith.constant 0 : index
    %137 = vector.load %arg5[%c11, %c0_59] : memref<32x128xf32, #tpu.memory_space<vmem>>, vector<16x80xf32>
    %c648 = arith.constant 648 : index
    %c0_60 = arith.constant 0 : index
    %138 = vector.load %arg2[%c648, %c0_60] : memref<1048x128xf32, #tpu.memory_space<vmem>>, vector<80x32xf32>
    %cst_61 = arith.constant dense<0.000000e+00> : vector<16x32xf32>
    %139 = tpu.matmul %137, %138, %cst_61 {dimension_numbers = #tpu.dot_dimension_numbers<[1], [0], [0], [1], [0, 0, 1, 1], [], []>} : vector<16x80xf32>, vector<80x32xf32>, vector<16x32xf32> -> vector<16x32xf32>
    %140 = arith.addf %136, %139 : vector<16x32xf32>
    %c728 = arith.constant 728 : index
    %c0_62 = arith.constant 0 : index
    %141 = vector.load %arg2[%c728, %c0_62] : memref<1048x128xf32, #tpu.memory_space<vmem>>, vector<1x32xf32>
    %142 = vector.broadcast %141 : vector<1x32xf32> to vector<16x32xf32>
    %143 = arith.addf %140, %142 : vector<16x32xf32>
    %cst_63 = arith.constant 0.000000e+00 : f32
    %144 = vector.broadcast %cst_63 : f32 to vector<16x32xf32>
    %145 = arith.cmpf ogt, %143, %144 : vector<16x32xf32>
    %cst_64 = arith.constant 1.000000e-01 : f32
    %146 = vector.broadcast %cst_64 : f32 to vector<16x32xf32>
    %147 = arith.mulf %146, %143 : vector<16x32xf32>
    %148 = arith.select %145, %143, %147 : vector<16x32xi1>, vector<16x32xf32>
    %c8_65 = arith.constant 8 : index
    %c0_66 = arith.constant 0 : index
    %149 = vector.load %arg5[%c8_65, %c0_66] : memref<32x128xf32, #tpu.memory_space<vmem>>, vector<16x32xf32>
    tpu.vector_store %arg5[%c8_65, %c0_66], %148 {strides = array<i32>} : memref<32x128xf32, #tpu.memory_space<vmem>>, vector<16x32xf32>,
    %cst_67 = arith.constant 0.000000e+00 : f32
    %150 = vector.broadcast %cst_67 : f32 to vector<16x32xf32>
    %c7_68 = arith.constant 7 : index
    %c0_69 = arith.constant 0 : index
    %151 = vector.load %arg5[%c7_68, %c0_69] : memref<32x128xf32, #tpu.memory_space<vmem>>, vector<16x32xf32>
    %c736 = arith.constant 736 : index
    %c0_70 = arith.constant 0 : index
    %152 = vector.load %arg2[%c736, %c0_70] : memref<1048x128xf32, #tpu.memory_space<vmem>>, vector<32x32xf32>
    %cst_71 = arith.constant dense<0.000000e+00> : vector<16x32xf32>
    %153 = tpu.matmul %151, %152, %cst_71 {dimension_numbers = #tpu.dot_dimension_numbers<[1], [0], [0], [1], [0, 0, 1, 1], [], []>} : vector<16x32xf32>, vector<32x32xf32>, vector<16x32xf32> -> vector<16x32xf32>
    %154 = arith.addf %150, %153 : vector<16x32xf32>
    %c8_72 = arith.constant 8 : index
    %c0_73 = arith.constant 0 : index
    %155 = vector.load %arg5[%c8_72, %c0_73] : memref<32x128xf32, #tpu.memory_space<vmem>>, vector<16x32xf32>
    %c768 = arith.constant 768 : index
    %c0_74 = arith.constant 0 : index
    %156 = vector.load %arg2[%c768, %c0_74] : memref<1048x128xf32, #tpu.memory_space<vmem>>, vector<32x32xf32>
    %cst_75 = arith.constant dense<0.000000e+00> : vector<16x32xf32>
    %157 = tpu.matmul %155, %156, %cst_75 {dimension_numbers = #tpu.dot_dimension_numbers<[1], [0], [0], [1], [0, 0, 1, 1], [], []>} : vector<16x32xf32>, vector<32x32xf32>, vector<16x32xf32> -> vector<16x32xf32>
    %158 = arith.addf %154, %157 : vector<16x32xf32>
    %c9_76 = arith.constant 9 : index
    %c0_77 = arith.constant 0 : index
    %159 = vector.load %arg5[%c9_76, %c0_77] : memref<32x128xf32, #tpu.memory_space<vmem>>, vector<16x32xf32>
    %c800 = arith.constant 800 : index
    %c0_78 = arith.constant 0 : index
    %160 = vector.load %arg2[%c800, %c0_78] : memref<1048x128xf32, #tpu.memory_space<vmem>>, vector<32x32xf32>
    %cst_79 = arith.constant dense<0.000000e+00> : vector<16x32xf32>
    %161 = tpu.matmul %159, %160, %cst_79 {dimension_numbers = #tpu.dot_dimension_numbers<[1], [0], [0], [1], [0, 0, 1, 1], [], []>} : vector<16x32xf32>, vector<32x32xf32>, vector<16x32xf32> -> vector<16x32xf32>
    %162 = arith.addf %158, %161 : vector<16x32xf32>
    %c832 = arith.constant 832 : index
    %c0_80 = arith.constant 0 : index
    %163 = vector.load %arg2[%c832, %c0_80] : memref<1048x128xf32, #tpu.memory_space<vmem>>, vector<1x32xf32>
    %164 = vector.broadcast %163 : vector<1x32xf32> to vector<16x32xf32>
    %165 = arith.addf %162, %164 : vector<16x32xf32>
    %cst_81 = arith.constant 0.000000e+00 : f32
    %166 = vector.broadcast %cst_81 : f32 to vector<16x32xf32>
    %167 = arith.cmpf ogt, %165, %166 : vector<16x32xf32>
    %cst_82 = arith.constant 1.000000e-01 : f32
    %168 = vector.broadcast %cst_82 : f32 to vector<16x32xf32>
    %169 = arith.mulf %168, %165 : vector<16x32xf32>
    %170 = arith.select %167, %165, %169 : vector<16x32xi1>, vector<16x32xf32>
    %c8_83 = arith.constant 8 : index
    %c0_84 = arith.constant 0 : index
    %171 = vector.load %arg5[%c8_83, %c0_84] : memref<32x128xf32, #tpu.memory_space<vmem>>, vector<16x32xf32>
    tpu.vector_store %arg5[%c8_83, %c0_84], %170 {strides = array<i32>} : memref<32x128xf32, #tpu.memory_space<vmem>>, vector<16x32xf32>,
    %cst_85 = arith.constant 0.000000e+00 : f32
    %172 = vector.broadcast %cst_85 : f32 to vector<16x32xf32>
    %c7_86 = arith.constant 7 : index
    %c0_87 = arith.constant 0 : index
    %173 = vector.load %arg5[%c7_86, %c0_87] : memref<32x128xf32, #tpu.memory_space<vmem>>, vector<16x32xf32>
    %c840 = arith.constant 840 : index
    %c0_88 = arith.constant 0 : index
    %174 = vector.load %arg2[%c840, %c0_88] : memref<1048x128xf32, #tpu.memory_space<vmem>>, vector<32x32xf32>
    %cst_89 = arith.constant dense<0.000000e+00> : vector<16x32xf32>
    %175 = tpu.matmul %173, %174, %cst_89 {dimension_numbers = #tpu.dot_dimension_numbers<[1], [0], [0], [1], [0, 0, 1, 1], [], []>} : vector<16x32xf32>, vector<32x32xf32>, vector<16x32xf32> -> vector<16x32xf32>
    %176 = arith.addf %172, %175 : vector<16x32xf32>
    %c8_90 = arith.constant 8 : index
    %c0_91 = arith.constant 0 : index
    %177 = vector.load %arg5[%c8_90, %c0_91] : memref<32x128xf32, #tpu.memory_space<vmem>>, vector<16x32xf32>
    %c872 = arith.constant 872 : index
    %c0_92 = arith.constant 0 : index
    %178 = vector.load %arg2[%c872, %c0_92] : memref<1048x128xf32, #tpu.memory_space<vmem>>, vector<32x32xf32>
    %cst_93 = arith.constant dense<0.000000e+00> : vector<16x32xf32>
    %179 = tpu.matmul %177, %178, %cst_93 {dimension_numbers = #tpu.dot_dimension_numbers<[1], [0], [0], [1], [0, 0, 1, 1], [], []>} : vector<16x32xf32>, vector<32x32xf32>, vector<16x32xf32> -> vector<16x32xf32>
    %180 = arith.addf %176, %179 : vector<16x32xf32>
    %c9_94 = arith.constant 9 : index
    %c0_95 = arith.constant 0 : index
    %181 = vector.load %arg5[%c9_94, %c0_95] : memref<32x128xf32, #tpu.memory_space<vmem>>, vector<16x32xf32>
    %c904 = arith.constant 904 : index
    %c0_96 = arith.constant 0 : index
    %182 = vector.load %arg2[%c904, %c0_96] : memref<1048x128xf32, #tpu.memory_space<vmem>>, vector<32x32xf32>
    %cst_97 = arith.constant dense<0.000000e+00> : vector<16x32xf32>
    %183 = tpu.matmul %181, %182, %cst_97 {dimension_numbers = #tpu.dot_dimension_numbers<[1], [0], [0], [1], [0, 0, 1, 1], [], []>} : vector<16x32xf32>, vector<32x32xf32>, vector<16x32xf32> -> vector<16x32xf32>
    %184 = arith.addf %180, %183 : vector<16x32xf32>
    %c936 = arith.constant 936 : index
    %c0_98 = arith.constant 0 : index
    %185 = vector.load %arg2[%c936, %c0_98] : memref<1048x128xf32, #tpu.memory_space<vmem>>, vector<1x32xf32>
    %186 = vector.broadcast %185 : vector<1x32xf32> to vector<16x32xf32>
    %187 = arith.addf %184, %186 : vector<16x32xf32>
    %cst_99 = arith.constant 0.000000e+00 : f32
    %188 = vector.broadcast %cst_99 : f32 to vector<16x32xf32>
    %189 = arith.cmpf ogt, %187, %188 : vector<16x32xf32>
    %cst_100 = arith.constant 1.000000e-01 : f32
    %190 = vector.broadcast %cst_100 : f32 to vector<16x32xf32>
    %191 = arith.mulf %190, %187 : vector<16x32xf32>
    %192 = arith.select %189, %187, %191 : vector<16x32xi1>, vector<16x32xf32>
    %c8_101 = arith.constant 8 : index
    %c0_102 = arith.constant 0 : index
    %193 = vector.load %arg5[%c8_101, %c0_102] : memref<32x128xf32, #tpu.memory_space<vmem>>, vector<16x32xf32>
    tpu.vector_store %arg5[%c8_101, %c0_102], %192 {strides = array<i32>} : memref<32x128xf32, #tpu.memory_space<vmem>>, vector<16x32xf32>,
    %cst_103 = arith.constant 0.000000e+00 : f32
    %194 = vector.broadcast %cst_103 : f32 to vector<16x128xf32>
    %c7_104 = arith.constant 7 : index
    %c0_105 = arith.constant 0 : index
    %195 = vector.load %arg5[%c7_104, %c0_105] : memref<32x128xf32, #tpu.memory_space<vmem>>, vector<16x32xf32>
    %c944 = arith.constant 944 : index
    %c0_106 = arith.constant 0 : index
    %196 = vector.load %arg2[%c944, %c0_106] : memref<1048x128xf32, #tpu.memory_space<vmem>>, vector<32x128xf32>
    %cst_107 = arith.constant dense<0.000000e+00> : vector<16x128xf32>
    %197 = tpu.matmul %195, %196, %cst_107 {dimension_numbers = #tpu.dot_dimension_numbers<[1], [0], [0], [1], [0, 0, 1, 1], [], []>} : vector<16x32xf32>, vector<32x128xf32>, vector<16x128xf32> -> vector<16x128xf32>
    %198 = arith.addf %194, %197 : vector<16x128xf32>
    %c8_108 = arith.constant 8 : index
    %c0_109 = arith.constant 0 : index
    %199 = vector.load %arg5[%c8_108, %c0_109] : memref<32x128xf32, #tpu.memory_space<vmem>>, vector<16x32xf32>
    %c976 = arith.constant 976 : index
    %c0_110 = arith.constant 0 : index
    %200 = vector.load %arg2[%c976, %c0_110] : memref<1048x128xf32, #tpu.memory_space<vmem>>, vector<32x128xf32>
    %cst_111 = arith.constant dense<0.000000e+00> : vector<16x128xf32>
    %201 = tpu.matmul %199, %200, %cst_111 {dimension_numbers = #tpu.dot_dimension_numbers<[1], [0], [0], [1], [0, 0, 1, 1], [], []>} : vector<16x32xf32>, vector<32x128xf32>, vector<16x128xf32> -> vector<16x128xf32>
    %202 = arith.addf %198, %201 : vector<16x128xf32>
    %c9_112 = arith.constant 9 : index
    %c0_113 = arith.constant 0 : index
    %203 = vector.load %arg5[%c9_112, %c0_113] : memref<32x128xf32, #tpu.memory_space<vmem>>, vector<16x32xf32>
    %c1008 = arith.constant 1008 : index
    %c0_114 = arith.constant 0 : index
    %204 = vector.load %arg2[%c1008, %c0_114] : memref<1048x128xf32, #tpu.memory_space<vmem>>, vector<32x128xf32>
    %cst_115 = arith.constant dense<0.000000e+00> : vector<16x128xf32>
    %205 = tpu.matmul %203, %204, %cst_115 {dimension_numbers = #tpu.dot_dimension_numbers<[1], [0], [0], [1], [0, 0, 1, 1], [], []>} : vector<16x32xf32>, vector<32x128xf32>, vector<16x128xf32> -> vector<16x128xf32>
    %206 = arith.addf %202, %205 : vector<16x128xf32>
    %c1040 = arith.constant 1040 : index
    %c0_116 = arith.constant 0 : index
    %207 = vector.load %arg2[%c1040, %c0_116] : memref<1048x128xf32, #tpu.memory_space<vmem>>, vector<1x128xf32>
    %208 = vector.broadcast %207 : vector<1x128xf32> to vector<16x128xf32>
    %209 = arith.addf %206, %208 : vector<16x128xf32>
    %210 = math.tanh %209 : vector<16x128xf32>
    %c0_117 = arith.constant 0 : index
    %c0_118 = arith.constant 0 : index
    %211 = vector.load %arg3[%c0_117, %c0_118] : memref<16x128xf32, #tpu.memory_space<vmem>>, vector<16x128xf32>
    tpu.vector_store %arg3[%c0_117, %c0_118], %210 {strides = array<i32>} : memref<16x128xf32, #tpu.memory_space<vmem>>, vector<16x128xf32>,
    return
  }
}

</mosaic_0001>

<bundles_post_ra>
// kernel: toucan_forward.1
= control target key start
LH: loop header
LB: loop body
LE: loop exit
PB: predicated region body
PF: predicated region fallthrough
CT: control target
= control target key end

     0   :  { %10 = vsyncpa [#allocation5], 0  ;;  %s2935_s0 = inlined_call_operand.vmem [shape: f32[3], index: 0, kind: input, shape index: {}]   ;;  %s2936_s1 = inlined_call_operand.hbm [shape: f32[8,62], index: 1, kind: input, shape index: {}]   ;;  %s2937_s2 = inlined_call_operand.hbm [shape: f32[1048,128], index: 2, kind: input, shape index: {}]   ;;  %s2938_s3 = inlined_call_operand.vmem [shape: f32[16,128], index: 3, kind: output, shape index: {0}]   ;;  %s2939_s4 = inlined_call_operand.vmem [shape: f32[8,128], index: 4, kind: output, shape index: {1}]  }
   0x1   :  { %11 = vsyncpa [#allocation4], 0  ;;  %s19_s17 = sshll.u32 %s2935_s0, 4  ;;  %s20_s17 = int_to_ptr.vmem [resolvable:$true] %s19_s17 }
   0x2   :  { %12 = vsyncpa [#allocation8], 0  ;;  %s2733_s18 = scalar_lea.vmem %s20_s17, 16  ;;  %p2738_p1 = scmp.lt.s32.totalorder %s20_s17, %s20_s17 }
   0x3   :  { %p2734_p0 = scmp.ne.s32.totalorder %s20_s17, %s2733_s18  ;;  %p2739_p2 = scmp.lt.s32.totalorder %s2733_s18, %s2733_s18 }
   0x5   :  { %p2740_p3 = por %p2739_p2, %p2738_p1 }
   0x7   :  { %p2741_p4 = pnand %p2740_p3, %p2734_p0 }
   0x9   :  { %2744 = shalt.err (!%p2741_p4)
}
   0xa   :  { %s2795_s19 = smov [#allocation3]   ;;  %s2796_s20 = smov [#allocation6]  }
   0xb   :  { %22 = dma.vmem_to_smem %s20_s17, 16, %s2795_s19, [#allocation5]  }
   0xc   :  { %s29_s21 = sshll.u32 %s2796_s20, 4  ;;  %s2797_s22 = smov [#allocation7]   ;;  %s30_s21 = int_to_ptr.vmem [resolvable:$true] %s29_s21 }
   0xd   :  { %s38_s23 = sshll.u32 %s2797_s22, 4  ;;  %s2745_s0 = scalar_lea.hbm %s2936_s1, 128  ;;  %s39_s23 = int_to_ptr.vmem [resolvable:$true] %s38_s23 }
   0xe   :  { %p2746_p5 = scmp.ne.s32.totalorder %s2936_s1, %s2745_s0  ;;  %p2749_p6 = scmp.lt.u32.totalorder %s2745_s0, %s2936_s1 }
  0x10   :  { %p2751_p7 = pnand %p2749_p6, %p2746_p5 }
  0x12   :  { %2754 = shalt.err (!%p2751_p7)
}
  0x13   :  { %s2755_s30 = scalar_lea.vmem %s30_s21, 128  ;;  %p2760_p9 = scmp.lt.s32.totalorder %s30_s21, %s30_s21 }
  0x14   :  { %p2756_p8 = scmp.ne.s32.totalorder %s30_s21, %s2755_s30  ;;  %p2761_p10 = scmp.lt.s32.totalorder %s2755_s30, %s2755_s30 }
  0x16   :  { %p2762_p11 = por %p2761_p10, %p2760_p9 }
  0x18   :  { %p2763_p12 = pnand %p2762_p11, %p2756_p8 }
  0x1a   :  { %2766 = shalt.err (!%p2763_p12)
}
  0x1b   :  { %32 = dma.hbm_to_vmem [thread:$0]  %s2936_s1, 128, %s30_s21, [#allocation4]  }
  0x1c   :  { %s2767_s9 = scalar_lea.hbm %s2937_s2, 16768 }
  0x1d   :  { %p2768_p13 = scmp.ne.s32.totalorder %s2937_s2, %s2767_s9  ;;  %p2771_p0 = scmp.lt.u32.totalorder %s2767_s9, %s2937_s2 }
  0x1f   :  { %p2773_p1 = pnand %p2771_p0, %p2768_p13 }
  0x21   :  { %2776 = shalt.err (!%p2773_p1)
}
  0x22   :  { %s2777_s14 = scalar_lea.vmem %s39_s23, 16768  ;;  %p2782_p3 = scmp.lt.s32.totalorder %s39_s23, %s39_s23 }
  0x23   :  { %p2778_p2 = scmp.ne.s32.totalorder %s39_s23, %s2777_s14  ;;  %p2783_p4 = scmp.lt.s32.totalorder %s2777_s14, %s2777_s14 }
  0x25   :  { %p2784_p5 = por %p2783_p4, %p2782_p3 }
  0x27   :  { %p2785_p6 = pnand %p2784_p5, %p2778_p2 }
  0x29   :  { %2788 = shalt.err (!%p2785_p6)
}
  0x2a   :  { %s2798_s1 = smov 128   ;;  %s2799_s15 = smov 8  }
  0x2b   :  { %44 = dma.hbm_to_vmem [thread:$0]  %s2937_s2, 16768, %s39_s23, [#allocation8], %s2798_s1, %s2798_s1, %s2799_s15  }
  0x2c   :  { %2789 = dma.done.wait [#allocation5], 16  }
  0x2d   :  { %2790 = vsyncadd [#allocation5], 4294967280 }
  0x2e   :  { %2791 = dma.done.wait [#allocation4], 128  }
  0x2f   :  { %2792 = vsyncadd [#allocation4], 4294967168 }
  0x30   :  { %2793 = dma.done.wait [#allocation8], 16768  }
  0x31   :  { %2794 = vsyncadd [#allocation8], 4294950528 }
  0x32   :  { %54 = sfence }
  0x33   :  { %v59_v0 = vld [vmem:[#allocation7] sm:$0xff]  ;;  %v60_v1 = vld [vmem:[#allocation7 + $0x8] sm:$0xff]  ;;  %v61_v2 = vld [vmem:[#allocation7 + $0x10] sm:$0xff]  ;;  %v2800_v3 = vmov 0.0|0.0   ;;  %vm2801_vm0 = vmmov 0   ;;  %v2802_v6 = vmov 0.0   ;;  %v234_v42 = vlaneseq }
  0x34   :  { %2449 = vmatprep.subr.bf16.mxu1 %v2800_v3  ;;  %v2450_v4 = vpack.c.bf16 %v60_v1, %v59_v0  ;;  %v62_v5 = vld [vmem:[#allocation7 + $0x18] sm:$0xff]  ;;  %2164 = vmatprep.mubr.msk.f32.mxu1 %vm2801_vm0, %v2802_v6  ;;  %381 = vst [vmem:[#allocation2] sm:$0xff] %v2802_v6  ;;  %382 = vst [vmem:[#allocation2 + $0x8] sm:$0xff] %v2802_v6  ;;  %v63_v8 = vld [vmem:[#allocation7 + $0x20] sm:$0xff]  ;;  %vm76_vm1 = vcmask 1045504   ;;  %vm2803_vm2 = vmmov 1  }
  0x35   :  { %383 = vst [vmem:[#allocation2 + $0x10] sm:$0xff] %v2802_v6  ;;  %384 = vst [vmem:[#allocation2 + $0x18] sm:$0xff] %v2802_v6  ;;  %v2453_v7 = vpack.c.bf16 %v62_v5, %v61_v2  ;;  %v64_v9 = vld [vmem:[#allocation7 + $0x28] sm:$0xff]  ;;  %v65_v11 = vld [vmem:[#allocation7 + $0x30] sm:$0xff]  ;;  %vm72_vm4 = vcmask 506880   ;;  %vm160_vm5 = vcmask 261120  }
  0x36   :  { %2451 = vmatpush3.bf16.msra.mxu1 %v2450_v4  ;;  %v2456_v10 = vpack.c.bf16 %v64_v9, %v63_v8  ;;  %v66_v12 = vld [vmem:[#allocation7 + $0x38] sm:$0x3f]  ;;  %vm2460_vm3 = vmpackc.low %vm76_vm1, %vm2803_vm2  ;;  %v151_v15 = vld [vmem:[#allocation7 + $0x48] sm:$0xff]  ;;  %v2804_v26 = vmov 1   ;;  %s1945_s2 = sld [smem:[#allocation3 + $0x2]]  ;;  %s1944_s18 = sld [smem:[#allocation3 + $0x1]] }
  0x37   :  { %2452 = vmatprep.subr.bf16.mxu1 %v2800_v3  ;;  %v2459_v13 = vpack.c.bf16 %v66_v12, %v65_v11  ;;  %v58_v14 = vld [vmem:[#allocation6] sm:$0xff]  ;;  %v152_v16 = vld [vmem:[#allocation7 + $0x50] sm:$0xff]  ;;  %v154_v19 = vld [vmem:[#allocation7 + $0x60] sm:$0xff]  ;;  %2721 = vset.pattern.permute.xlu0 %v2804_v26  ;;  %v235_v45 = vand.u32 127, %v234_v42  ;;  %s55_s19 = sld [smem:[#allocation3]]  ;;  %v2805_v0 = vmov 2  }
  0x38   :  { %v153_v17 = vld [vmem:[#allocation7 + $0x58] sm:$0xff]  ;;  %v2463_v18 = vpack.c.bf16 %v152_v16, %v151_v15  ;;  %v1946_v21 = vld [vmem:[#allocation7 + $0x40] ss:$0 sm:$0xff]  ;;  %v1949_v27 = vld [vmem:[#allocation7 + $0x68] ss:$0 sm:$0xff]  ;;  %vm389_vm10 = vcmask 648192  }
  0x39   :  { %v2466_v20 = vpack.c.bf16 %v154_v19, %v153_v17  ;;  %vm255_vm7 = vcmp.eq.s32.totalorder %v235_v45, 2  ;;  %vm254_vm8 = vcmp.eq.s32.totalorder %v235_v45, 1  ;;  %v299_v58 = vld [vmem:[#allocation7 + $0x80] sm:$0xff]  ;;  %v300_v59 = vld [vmem:[#allocation7 + $0x88] sm:$0xff]  ;;  %v301_v62 = vld [vmem:[#allocation7 + $0x90] sm:$0xff]  ;;  %vm273_vm9 = vcmp.eq.s32.totalorder %v235_v45, 0 }
  0x3a   :  { %2454 = vmatpush3.bf16.msra.mxu1 %v2453_v7  ;;  %v2469_v61 = vpack.c.bf16 %v300_v59, %v299_v58  ;;  %v302_v63 = vld [vmem:[#allocation7 + $0x98] sm:$0xff]  ;;  %v428_v2 = vld [vmem:[#allocation7 + $0xa8] sm:$0xff]  ;;  %v429_v4 = vld [vmem:[#allocation7 + $0xb0] sm:$0xff]  ;;  %vm450_vm11 = vcmask 654336  }
  0x3b   :  { %2455 = vmatprep.subr.bf16.mxu1 %v2800_v3  ;;  %v2472_v1 = vpack.c.bf16 %v302_v63, %v301_v62  ;;  %v440_v5 = vld [vmem:[#allocation7 + $0xf8] sm:$0xff]  ;;  %v2494_v7 = vpack.c.bf16 %v429_v4, %v428_v2  ;;  %v441_v8 = vld [vmem:[#allocation7 + $0x100] sm:$0xff]  ;;  %v442_v26 = vld [vmem:[#allocation7 + $0x108] sm:$0xff] }
  0x3c   :  { %v256_v47 = vstv %s1945_s2  ;;  %v258_v50 = vstv %s1944_s18  ;;  %v430_v9 = vld [vmem:[#allocation7 + $0xb8] sm:$0xff]  ;;  %v2474_v11 = vpack.c.bf16 %v441_v8, %v440_v5  ;;  %v437_v45 = vld [vmem:[#allocation7 + $0xf0] sm:$0xff] }
  0x3d   :  { %v257_v49 = vsel %vm255_vm7, %v256_v47, 1.0  ;;  %2495 = vmatprep.subr.bf16.mxu0 %v2494_v7 }
  0x3e   :  { %2457 = vmatpush3.bf16.msra.mxu1 %v2456_v10  ;;  %v259_v53 = vsel %vm254_vm8, %v258_v50, %v257_v49  ;;  %v431_v10 = vld [vmem:[#allocation7 + $0xc0] sm:$0xff]  ;;  %2497 = vmatpush3.bf16.msra.mxu0 %v2494_v7  ;;  %v615_v50 = vld [vmem:[#allocation7 + $0x148] sm:$0xff] }
  0x3f   :  { %2458 = vmatprep.subr.bf16.mxu1 %v2800_v3  ;;  %v2498_v12 = vpack.c.bf16 %v431_v10, %v430_v9  ;;  %v617_v10 = vld [vmem:[#allocation7 + $0x158] sm:$0xff] }
  0x41   :  { %2499 = vmatprep.subr.bf16.mxu0 %v2498_v12 }
  0x42   :  { %2461 = vmatpush3.bf16.msk.msra.mxu1 %vm2460_vm3, %v2459_v13  ;;  %2501 = vmatpush3.bf16.msra.mxu0 %v2498_v12 }
  0x43   :  { %2462 = vmatprep.subr.bf16.mxu1 %v2800_v3 }
  0x45   :  { %2165 = vmatmul.mubr.msk.f32.vlgmr.msra.gmra.mrb[0].mxu1 %vm72_vm4, %v58_v14 }
  0x46   :  { %2175 = vmatprep.mubr.msk.f32.mxu1 %vm2801_vm0, %v2802_v6  ;;  %2464 = vmatpush3.bf16.msra.mxu1 %v2463_v18 }
  0x47   :  { %2465 = vmatprep.subr.bf16.mxu1 %v2800_v3 }
  0x4a   :  { %2467 = vmatpush3.bf16.msra.mxu1 %v2466_v20  ;;  %v1951_v20 = vld [vmem:[#allocation7 + $0x70] ss:$0 sm:$0xff] }
  0x4b   :  { %2468 = vmatprep.subr.bf16.mxu1 %v2800_v3 }
 0x118   :  { %v146_v22 = vpop.f32.mrb[0].mxu1 }
 0x119   :  { %v147_v23 = vadd.f32 %v1946_v21, %v146_v22  ;;  %v2166_v24 = vpop.f32.mrb[1].mxu1 }
 0x11b   :  { %2723 = vtanh.f32 %v147_v23  ;;  %v1952_v23 = vld [vmem:[#allocation7 + $0x78] ss:$0 sm:$0xff] }
 0x125   :  { %v2867_v25 = vpop.eup %2723 }
 0x126   :  { %2176 = vmatmul.mubr.msk.f32.vlgmr.msra.gmra.mrb[2].mxu1 %vm160_vm5, %v2867_v25 }
 0x127   :  { %2186 = vmatprep.mubr.msk.f32.mxu1 %vm2801_vm0, %v2802_v6  ;;  %2470 = vmatpush3.bf16.msra.mxu1 %v2469_v61 }
 0x128   :  { %2471 = vmatprep.subr.bf16.mxu1 %v2800_v3 }
 0x12b   :  { %2473 = vmatpush3.bf16.msra.mxu1 %v2472_v1 }
 0x12c   :  { %2475 = vmatprep.subr.bf16.mxu1 %v2474_v11 }
 0x1f9   :  { %v230_v28 = vpop.f32.mrb[2].mxu1 }
 0x1fa   :  { %v231_v29 = vadd.f32 %v1949_v27, %v230_v28  ;;  %v2177_v30 = vpop.f32.mrb[3].mxu1  ;;  %v443_v27 = vld [vmem:[#allocation7 + $0x110] sm:$0xff] }
 0x1fc   :  { %vm236_vm6 = vcmp.ne.f32.partialorder %v231_v29, 0.0 }
 0x1fd   :  { %v237_v31 = vsel %vm236_vm6, 1.0, %v2802_v6  ;;  %v245_v33 = vsel %vm236_vm6, %v231_v29, 0.0  ;;  %v266_v6 = vstv %s55_s19 }
 0x1fe   :  { %v238_v32 = vrot.slane %v237_v31, 4  ;;  %v246_v35 = vrot.slane %v245_v33, 4 }
 0x200   :  { %v239_v34 = vadd.f32 %v238_v32, %v237_v31  ;;  %v247_v38 = vadd.f32 %v246_v35, %v245_v33  ;;  %v2478_v31 = vpack.c.bf16 %v443_v27, %v442_v26  ;;  %v432_v32 = vld [vmem:[#allocation7 + $0xc8] sm:$0xff]  ;;  %v433_v33 = vld [vmem:[#allocation7 + $0xd0] sm:$0xff]  ;;  %v444_v35 = vld [vmem:[#allocation7 + $0x118] sm:$0xff] }
 0x201   :  { %v710_v27 = vld [vmem:[#allocation7 + $0x198] sm:$0xff] }
 0x202   :  { %v240_v36 = vrot.slane %v239_v34, 2  ;;  %v248_v41 = vrot.slane %v247_v38, 2 }
 0x204   :  { %v241_v37 = vadd.f32 %v240_v36, %v239_v34  ;;  %v249_v44 = vadd.f32 %v248_v41, %v247_v38  ;;  %v2502_v34 = vpack.c.bf16 %v433_v33, %v432_v32  ;;  %v445_v36 = vld [vmem:[#allocation7 + $0x120] sm:$0xff]  ;;  %v434_v38 = vld [vmem:[#allocation7 + $0xd8] sm:$0xff]  ;;  %v447_v41 = vld [vmem:[#allocation7 + $0x130] sm:$0xff] }
 0x206   :  { %v242_v39 = vrot.slane %v241_v37, 1  ;;  %v250_v46 = vrot.slane %v249_v44, 1  ;;  %2503 = vmatprep.subr.bf16.mxu0 %v2502_v34 }
 0x207   :  { %2505 = vmatpush3.bf16.msra.mxu0 %v2502_v34  ;;  %v714_v34 = vld [vmem:[#allocation7 + $0x1b8] sm:$0xff] }
 0x208   :  { %v243_v40 = vadd.f32 %v242_v39, %v241_v37  ;;  %v251_v48 = vadd.f32 %v250_v46, %v249_v44  ;;  %v2482_v37 = vpack.c.bf16 %v445_v36, %v444_v35  ;;  %v435_v39 = vld [vmem:[#allocation7 + $0xe0] sm:$0xff]  ;;  %v436_v44 = vld [vmem:[#allocation7 + $0xe8] sm:$0xff]  ;;  %v448_v46 = vld [vmem:[#allocation7 + $0x138] sm:$0xff] }
 0x209   :  { %v2510_v47 = vpack.c.bf16 %v437_v45, %v436_v44  ;;  %v715_v35 = vld [vmem:[#allocation7 + $0x1c0] sm:$0xff]  ;;  %v805_v44 = vld [vmem:[#allocation7 + $0x1e8] sm:$0xff]  ;;  %v806_v45 = vld [vmem:[#allocation7 + $0x1f0] sm:$0xff] }
 0x20a   :  { %v244_v43 = vmax.f32 %v243_v40, 1.0  ;;  %v2506_v40 = vpack.c.bf16 %v435_v39, %v434_v38  ;;  %v716_v38 = vld [vmem:[#allocation7 + $0x1c8] sm:$0xff]  ;;  %v717_v39 = vld [vmem:[#allocation7 + $0x1d0] sm:$0xff] }
 0x20c   :  { %2725 = vrcp.f32 %v244_v43  ;;  %2507 = vmatprep.subr.bf16.mxu0 %v2506_v40 }
 0x20d   :  { %2509 = vmatpush3.bf16.msra.mxu0 %v2506_v40  ;;  %v2546_v40 = vpack.c.bf16 %v717_v39, %v716_v38  ;;  %v1105_v38 = vld [vmem:[#allocation7 + $0x2e0] sm:$0xff]  ;;  %v1106_v39 = vld [vmem:[#allocation7 + $0x2e8] sm:$0xff] }
 0x20e   :  { %2511 = vmatprep.subr.bf16.mxu0 %v2510_v47 }
 0x211   :  { %2513 = vmatpush3.bf16.msra.mxu0 %v2510_v47  ;;  %v807_v47 = vld [vmem:[#allocation7 + $0x1f8] sm:$0xff] }
 0x216   :  { %v2726_v51 = vpop.eup %2725 }
 0x217   :  { %v253_v52 = vmul.f32 %v2726_v51, %v251_v48  ;;  %v449_v48 = vld [vmem:[#allocation7 + $0x140] sm:$0xff]  ;;  %v616_v51 = vld [vmem:[#allocation7 + $0x150] sm:$0xff] }
 0x218   :  { %v2490_v49 = vpack.c.bf16 %v449_v48, %v448_v46  ;;  %v2554_v46 = vpack.c.bf16 %v806_v45, %v805_v44  ;;  %v808_v48 = vld [vmem:[#allocation7 + $0x200] sm:$0xff]  ;;  %v1969_v44 = vld [vmem:[#allocation7 + $0x2d8] ss:$0 sm:$0xff] }
 0x219   :  { %v260_v54 = vsub.f32 %v231_v29, %v253_v52 }
 0x21b   :  { %v261_v55 = vmul.f32 %v260_v54, %v259_v53  ;;  %v386_v53 = vshrl.u32 %v234_v42, 7  ;;  %v1953_v54 = vld [vmem:[#allocation7 + $0xa0] ss:$0 sm:$0xff] }
 0x21d   :  { %v262_v56 = vadd.f32 %v261_v55, %v253_v52  ;;  %v2514_v52 = vpack.c.bf16 %v616_v51, %v615_v50  ;;  %v387_v55 = vsub.s32 0, %v386_v53  ;;  %v403_v58 = vsub.s32 3, %v386_v53  ;;  %v809_v51 = vld [vmem:[#allocation7 + $0x208] sm:$0xff] }
 0x21e   :  { %v413_v61 = vsub.s32 5, %v386_v53  ;;  %v418_v62 = vsub.s32 6, %v386_v53  ;;  %v423_v63 = vsub.s32 7, %v386_v53 }
 0x21f   :  { %v263_v57 = vsel %vm236_vm6, %v262_v56, %v231_v29  ;;  %2515 = vmatprep.subr.bf16.mxu0 %v2514_v52  ;;  %v393_v56 = vsub.s32 1, %v386_v53 }
 0x220   :  { %279 = vperm.xlu0 %2721, %v263_v57   ;;  %v264_v60 = vmul.f32 1.442695, %v263_v57 }
 0x222   :  { %2727 = vpow2.f32 %v264_v60  ;;  %v408_v60 = vsub.s32 4, %v386_v53 }
 0x224   :  { %2722 = vset.pattern.permute.xlu0 %v2805_v0 }
 0x225   :  { %290 = vperm.xlu0 %2722, %v263_v57  }
 0x22c   :  { %v2728_v13 = vpop.eup %2727 }
 0x22d   :  { %v267_v3 = vmul.f32 %v2728_v13, %v266_v6 }
 0x22f   :  { %v268_v14 = vmax.f32 %v267_v3, 0.0 }
 0x231   :  { %v269_v15 = vmin.f32 %v268_v14, 1000000.0  ;;  %v619_v14 = vld [vmem:[#allocation7 + $0x168] sm:$0xff] }
 0x233   :  { %v270_v16 = vadd.f32 0.5, %v269_v15 }
 0x235   :  { %v271_v17 = vfloor.f32 %v270_v16 }
 0x237   :  { %v272_v18 = vmax.f32 %v271_v17, 1.0  ;;  %v620_v17 = vld [vmem:[#allocation7 + $0x170] sm:$0xff] }
 0x239   :  { %v274_v19 = vsel %vm273_vm9, %v272_v18, %v263_v57  ;;  %v398_v57 = vsub.s32 2, %v386_v53 }
 0x23a   :  { %275 = vst [vmem:[%s2939_s4] sm:$0xff] %v274_v19  ;;  %v2522_v19 = vpack.c.bf16 %v620_v17, %v619_v14  ;;  %v996_v14 = vld [vmem:[#allocation7 + $0x290] sm:$0xff]  ;;  %v998_v17 = vld [vmem:[#allocation7 + $0x2a0] sm:$0xff] }
 0x29f   :  { %v280_v21 = vpop.permute.xlu0 %279 }
 0x2a0   :  { %v286_v22 = vmul.f32 %v1951_v20, %v280_v21  ;;  %v621_v20 = vld [vmem:[#allocation7 + $0x178] sm:$0xff]  ;;  %v622_v21 = vld [vmem:[#allocation7 + $0x180] sm:$0xff] }
 0x2a2   :  { %v287_v28 = vadd.f32 %v2867_v25, %v286_v22  ;;  %v446_v25 = vld [vmem:[#allocation7 + $0x128] sm:$0xff]  ;;  %v2526_v22 = vpack.c.bf16 %v622_v21, %v621_v20  ;;  %v1000_v21 = vld [vmem:[#allocation7 + $0x2b0] sm:$0xff] }
 0x2a3   :  { %v2486_v43 = vpack.c.bf16 %v447_v41, %v446_v25  ;;  %v718_v25 = vld [vmem:[#allocation7 + $0x1d8] sm:$0xff]  ;;  %v719_v41 = vld [vmem:[#allocation7 + $0x1e0] sm:$0xff]  ;;  %v999_v20 = vld [vmem:[#allocation7 + $0x2a8] sm:$0xff] }
 0x2a4   :  { %v291_v24 = vpop.permute.xlu0 %290 }
 0x2a5   :  { %v297_v29 = vmul.f32 %v1952_v23, %v291_v24  ;;  %v623_v23 = vld [vmem:[#allocation7 + $0x188] sm:$0xff]  ;;  %v624_v24 = vld [vmem:[#allocation7 + $0x190] sm:$0xff] }
 0x2a6   :  { %v2530_v26 = vpack.c.bf16 %v624_v24, %v623_v23  ;;  %v2602_v23 = vpack.c.bf16 %v1000_v21, %v999_v20  ;;  %v1001_v24 = vld [vmem:[#allocation7 + $0x2b8] sm:$0xff] }
 0x2a7   :  { %v298_v30 = vadd.f32 %v297_v29, %v287_v28  ;;  %v711_v28 = vld [vmem:[#allocation7 + $0x1a0] sm:$0xff] }
 0x2a8   :  { %v2534_v29 = vpack.c.bf16 %v711_v28, %v710_v27  ;;  %v1003_v28 = vld [vmem:[#allocation7 + $0x2c8] sm:$0xff] }
 0x2a9   :  { %2187 = vmatmul.mubr.msk.f32.vlgmr.msra.gmra.mrb[4].mxu1 %vm160_vm5, %v298_v30  ;;  %v712_v30 = vld [vmem:[#allocation7 + $0x1a8] sm:$0xff] }
 0x2aa   :  { %2477 = vmatpush3.bf16.msra.mxu1 %v2474_v11  ;;  %v618_v11 = vld [vmem:[#allocation7 + $0x160] sm:$0xff] }
 0x2ab   :  { %2479 = vmatprep.subr.bf16.mxu1 %v2478_v31  ;;  %v2518_v3 = vpack.c.bf16 %v618_v11, %v617_v10  ;;  %v908_v11 = vld [vmem:[#allocation7 + $0x278] sm:$0xff] }
 0x2ae   :  { %2481 = vmatpush3.bf16.msra.mxu1 %v2478_v31  ;;  %v713_v31 = vld [vmem:[#allocation7 + $0x1b0] sm:$0xff] }
 0x2af   :  { %2483 = vmatprep.subr.bf16.mxu1 %v2482_v37  ;;  %v2538_v32 = vpack.c.bf16 %v713_v31, %v712_v30 }
 0x2b2   :  { %2485 = vmatpush3.bf16.msra.mxu1 %v2482_v37  ;;  %v2542_v37 = vpack.c.bf16 %v715_v35, %v714_v34  ;;  %v1113_v34 = vld [vmem:[#allocation7 + $0x310] sm:$0xff] }
 0x2b3   :  { %2487 = vmatprep.subr.bf16.mxu1 %v2486_v43 }
 0x2b6   :  { %2489 = vmatpush3.bf16.msra.mxu1 %v2486_v43  ;;  %v2550_v43 = vpack.c.bf16 %v719_v41, %v718_v25 }
 0x2b7   :  { %2491 = vmatprep.subr.bf16.mxu1 %v2490_v49 }
 0x2ba   :  { %2493 = vmatpush3.bf16.msra.mxu1 %v2490_v49  ;;  %v2558_v49 = vpack.c.bf16 %v808_v48, %v807_v47 }
 0x37c   :  { %v377_v59 = vpop.f32.mrb[4].mxu1 }
 0x37d   :  { %v378_v0 = vadd.f32 %v1953_v54, %v377_v59  ;;  %v2188_v1 = vpop.f32.mrb[5].mxu1  ;;  %v814_v59 = vld [vmem:[#allocation7 + $0x230] sm:$0xff] }
 0x37e   :  { %v903_v1 = vld [vmem:[#allocation7 + $0x250] sm:$0xff] }
 0x37f   :  { %v388_v2 = vrot.slane %v378_v0, %v387_v55  ;;  %v394_v4 = vrot.slane %v378_v0, %v393_v56  ;;  %v399_v5 = vrot.slane %v378_v0, %v398_v57  ;;  %v404_v6 = vrot.slane %v378_v0, %v403_v58  ;;  %v811_v55 = vld [vmem:[#allocation7 + $0x218] sm:$0xff]  ;;  %v812_v56 = vld [vmem:[#allocation7 + $0x220] sm:$0xff]  ;;  %v813_v58 = vld [vmem:[#allocation7 + $0x228] sm:$0xff] }
 0x380   :  { %v409_v7 = vrot.slane %v378_v0, %v408_v60  ;;  %v414_v8 = vrot.slane %v378_v0, %v413_v61  ;;  %v419_v42 = vrot.slane %v378_v0, %v418_v62  ;;  %v424_v9 = vrot.slane %v378_v0, %v423_v63  ;;  %v900_v61 = vld [vmem:[#allocation7 + $0x238] sm:$0xff]  ;;  %v901_v62 = vld [vmem:[#allocation7 + $0x240] sm:$0xff]  ;;  %v902_v0 = vld [vmem:[#allocation7 + $0x248] sm:$0xff] }
 0x381   :  { %405 = vst.msk [vmem:[#allocation2 + $0xe] sm:$0x3] %vm389_vm10, %v404_v6  ;;  %390 = vst.msk [vmem:[#allocation2 + $0x8] sm:$0x3] %vm389_vm10, %v388_v2  ;;  %v2566_v57 = vpack.c.bf16 %v812_v56, %v811_v55  ;;  %v2570_v60 = vpack.c.bf16 %v814_v59, %v813_v58  ;;  %v2574_v63 = vpack.c.bf16 %v901_v62, %v900_v61  ;;  %v905_v6 = vld [vmem:[#allocation7 + $0x260] sm:$0xff]  ;;  %v1108_v55 = vld [vmem:[#allocation7 + $0x2f8] sm:$0xff] }
 0x382   :  { %395 = vst.msk [vmem:[#allocation2 + $0xa] sm:$0x3] %vm389_vm10, %v394_v4  ;;  %400 = vst.msk [vmem:[#allocation2 + $0xc] sm:$0x3] %vm389_vm10, %v399_v5  ;;  %v2578_v2 = vpack.c.bf16 %v903_v1, %v902_v0  ;;  %v904_v5 = vld [vmem:[#allocation7 + $0x258] sm:$0xff]  ;;  %v1279_v59 = vld [vmem:[#allocation7 + $0x320] sm:$0xff] }
 0x383   :  { %410 = vst.msk [vmem:[#allocation2 + $0x10] sm:$0x3] %vm389_vm10, %v409_v7  ;;  %415 = vst.msk [vmem:[#allocation2 + $0x12] sm:$0x3] %vm389_vm10, %v414_v8  ;;  %v2582_v8 = vpack.c.bf16 %v905_v6, %v904_v5  ;;  %v1282_v0 = vld [vmem:[#allocation7 + $0x338] sm:$0xff]  ;;  %v1389_v6 = vld [vmem:[#allocation7 + $0x368] sm:$0xff] }
 0x384   :  { %420 = vst.msk [vmem:[#allocation2 + $0x14] sm:$0x3] %vm389_vm10, %v419_v42  ;;  %425 = vst.msk [vmem:[#allocation2 + $0x16] sm:$0x3] %vm389_vm10, %v424_v9  ;;  %v906_v42 = vld [vmem:[#allocation7 + $0x268] sm:$0xff]  ;;  %v907_v9 = vld [vmem:[#allocation7 + $0x270] sm:$0xff] }
 0x385   :  { %v2586_v10 = vpack.c.bf16 %v907_v9, %v906_v42  ;;  %v1392_v9 = vld [vmem:[#allocation7 + $0x380] sm:$0xff] }
 0x389   :  { %v438_v12 = vld [vmem:[#allocation2 + $0x6] sm:$0xff] }
 0x38a   :  { %v426_v13 = vld [vmem:[#allocation2 + $0x5] sm:$0xff]  ;;  %2209 = vmatprep.mubr.msk.f32.mxu1 %vm450_vm11, %v438_v12 }
 0x38b   :  { %2232 = vmatprep.mubr.msk.f32.mxu0 %vm450_vm11, %v426_v13  ;;  %v439_v15 = vld [vmem:[#allocation2 + $0xe] sm:$0xff] }
 0x38c   :  { %v427_v16 = vld [vmem:[#allocation2 + $0xd] sm:$0xff]  ;;  %2210 = vmatmul.mubr.msk.f32.vlgmr.msra.gmra.mrb[6].mxu1 %vm450_vm11, %v439_v15 }
 0x38d   :  { %2233 = vmatmul.mubr.msk.f32.vlgmr.msra.gmra.mrb[0].mxu0 %vm450_vm11, %v427_v16  ;;  %v613_v18 = vld [vmem:[#allocation2 + $0x7] sm:$0xff]  ;;  %v614_v33 = vld [vmem:[#allocation2 + $0xf] sm:$0xff] }
 0x38e   :  { %2517 = vmatpush3.bf16.msra.mxu0 %v2514_v52  ;;  %2255 = vmatprep.mubr.msk.f32.mxu0 %vm450_vm11, %v613_v18  ;;  %v708_v36 = vld [vmem:[#allocation2 + $0x8] sm:$0xff]  ;;  %v709_v50 = vld [vmem:[#allocation2 + $0x10] sm:$0xff]  ;;  %v810_v52 = vld [vmem:[#allocation7 + $0x210] sm:$0xff] }
 0x38f   :  { %2519 = vmatprep.subr.bf16.mxu0 %v2518_v3  ;;  %v803_v53 = vld [vmem:[#allocation2 + $0x9] sm:$0xff]  ;;  %v2562_v54 = vpack.c.bf16 %v810_v52, %v809_v51  ;;  %v804_v4 = vld [vmem:[#allocation2 + $0x11] sm:$0xff]  ;;  %v997_v16 = vld [vmem:[#allocation7 + $0x298] sm:$0xff] }
 0x390   :  { %v898_v7 = vld [vmem:[#allocation2 + $0xa] sm:$0xff]  ;;  %v2598_v18 = vpack.c.bf16 %v998_v17, %v997_v16  ;;  %v994_v31 = vld [vmem:[#allocation2 + $0x13] sm:$0xff] }
 0x391   :  { %v909_v12 = vld [vmem:[#allocation7 + $0x280] sm:$0xff] }
 0x392   :  { %2521 = vmatpush3.bf16.msra.mxu0 %v2518_v3  ;;  %v2590_v13 = vpack.c.bf16 %v909_v12, %v908_v11  ;;  %v995_v3 = vld [vmem:[#allocation7 + $0x288] sm:$0xff]  ;;  %v1384_v12 = vld [vmem:[#allocation7 + $0x350] sm:$0xff] }
 0x393   :  { %2523 = vmatprep.subr.bf16.mxu0 %v2522_v19  ;;  %v2594_v15 = vpack.c.bf16 %v996_v14, %v995_v3  ;;  %v1383_v11 = vld [vmem:[#allocation7 + $0x348] sm:$0xff]  ;;  %v1976_v3 = vld [vmem:[#allocation7 + $0x340] ss:$0 sm:$0xff] }
 0x396   :  { %2525 = vmatpush3.bf16.msra.mxu0 %v2522_v19  ;;  %v899_v19 = vld [vmem:[#allocation2 + $0x12] sm:$0xff] }
 0x397   :  { %2527 = vmatprep.subr.bf16.mxu0 %v2526_v22 }
 0x39a   :  { %2529 = vmatpush3.bf16.msra.mxu0 %v2526_v22  ;;  %v993_v22 = vld [vmem:[#allocation2 + $0xb] sm:$0xff] }
 0x39b   :  { %2531 = vmatprep.subr.bf16.mxu0 %v2530_v26 }
 0x39e   :  { %2533 = vmatpush3.bf16.msra.mxu0 %v2530_v26  ;;  %v1002_v26 = vld [vmem:[#allocation7 + $0x2c0] sm:$0xff] }
 0x39f   :  { %2535 = vmatprep.subr.bf16.mxu0 %v2534_v29  ;;  %v2606_v27 = vpack.c.bf16 %v1002_v26, %v1001_v24 }
 0x3a1   :  { %2256 = vmatmul.mubr.msk.f32.vlgmr.msra.gmra.mrb[0].mxu0 %vm450_vm11, %v614_v33  ;;  %v1112_v33 = vld [vmem:[#allocation7 + $0x308] sm:$0xff] }
 0x3a2   :  { %2537 = vmatpush3.bf16.msra.mxu0 %v2534_v29  ;;  %2278 = vmatprep.mubr.msk.f32.mxu0 %vm450_vm11, %v708_v36  ;;  %v1004_v29 = vld [vmem:[#allocation7 + $0x2d0] sm:$0xff]  ;;  %v1114_v36 = vld [vmem:[#allocation7 + $0x318] sm:$0xff] }
 0x3a3   :  { %2539 = vmatprep.subr.bf16.mxu0 %v2538_v32  ;;  %v2610_v30 = vpack.c.bf16 %v1004_v29, %v1003_v28  ;;  %v1557_v28 = vld [vmem:[#allocation7 + $0x388] sm:$0xff]  ;;  %v1558_v29 = vld [vmem:[#allocation7 + $0x390] sm:$0xff] }
 0x3a6   :  { %2541 = vmatpush3.bf16.msra.mxu0 %v2538_v32  ;;  %v1111_v32 = vld [vmem:[#allocation7 + $0x300] sm:$0xff] }
 0x3a7   :  { %2543 = vmatprep.subr.bf16.mxu0 %v2542_v37  ;;  %v2614_v35 = vpack.c.bf16 %v1112_v33, %v1111_v32  ;;  %v1559_v32 = vld [vmem:[#allocation7 + $0x398] sm:$0xff]  ;;  %v1560_v33 = vld [vmem:[#allocation7 + $0x3a0] sm:$0xff] }
 0x3a9   :  { %2615 = vmatprep.subr.bf16.mxu1 %v2614_v35 }
 0x3aa   :  { %2545 = vmatpush3.bf16.msra.mxu0 %v2542_v37  ;;  %v2618_v37 = vpack.c.bf16 %v1114_v36, %v1113_v34  ;;  %2617 = vmatpush3.bf16.msra.mxu1 %v2614_v35  ;;  %v2658_v34 = vpack.c.bf16 %v1560_v33, %v1559_v32 }
 0x3ab   :  { %2547 = vmatprep.subr.bf16.mxu0 %v2546_v40 }
 0x3ac   :  { %2619 = vmatprep.subr.bf16.mxu1 %v2618_v37 }
 0x3ae   :  { %2549 = vmatpush3.bf16.msra.mxu0 %v2546_v40  ;;  %2621 = vmatpush3.bf16.msra.mxu1 %v2618_v37  ;;  %v2622_v40 = vpack.c.bf16 %v1106_v39, %v1105_v38  ;;  %v1667_v38 = vld [vmem:[#allocation7 + $0x3d0] sm:$0xff]  ;;  %v1668_v39 = vld [vmem:[#allocation7 + $0x3d8] sm:$0xff] }
 0x3af   :  { %2551 = vmatprep.subr.bf16.mxu0 %v2550_v43 }
 0x3b0   :  { %2623 = vmatprep.subr.bf16.mxu1 %v2622_v40 }
 0x3b2   :  { %2553 = vmatpush3.bf16.msra.mxu0 %v2550_v43 }
 0x3b3   :  { %2555 = vmatprep.subr.bf16.mxu0 %v2554_v46 }
 0x3b5   :  { %2279 = vmatmul.mubr.msk.f32.vlgmr.msra.gmra.mrb[0].mxu0 %vm450_vm11, %v709_v50 }
 0x3b6   :  { %2557 = vmatpush3.bf16.msra.mxu0 %v2554_v46  ;;  %2301 = vmatprep.mubr.msk.f32.mxu0 %vm450_vm11, %v803_v53 }
 0x3b7   :  { %2559 = vmatprep.subr.bf16.mxu0 %v2558_v49 }
 0x3ba   :  { %2561 = vmatpush3.bf16.msra.mxu0 %v2558_v49 }
 0x3bb   :  { %2563 = vmatprep.subr.bf16.mxu0 %v2562_v54 }
 0x3be   :  { %2565 = vmatpush3.bf16.msra.mxu0 %v2562_v54  ;;  %v1107_v54 = vld [vmem:[#allocation7 + $0x2f0] sm:$0xff] }
 0x3bf   :  { %2567 = vmatprep.subr.bf16.mxu0 %v2566_v57 }
 0x3c2   :  { %2569 = vmatpush3.bf16.msra.mxu0 %v2566_v57  ;;  %v2626_v57 = vpack.c.bf16 %v1108_v55, %v1107_v54 }
 0x3c3   :  { %2571 = vmatprep.subr.bf16.mxu0 %v2570_v60 }
 0x3c6   :  { %2573 = vmatpush3.bf16.msra.mxu0 %v2570_v60  ;;  %v1280_v60 = vld [vmem:[#allocation7 + $0x328] sm:$0xff] }
 0x3c7   :  { %2575 = vmatprep.subr.bf16.mxu0 %v2574_v63  ;;  %v2630_v62 = vpack.c.bf16 %v1280_v60, %v1279_v59 }
 0x3c9   :  { %2302 = vmatmul.mubr.msk.f32.vlgmr.msra.gmra.mrb[0].mxu0 %vm450_vm11, %v804_v4 }
 0x3ca   :  { %2577 = vmatpush3.bf16.msra.mxu0 %v2574_v63  ;;  %2324 = vmatprep.mubr.msk.f32.mxu0 %vm450_vm11, %v898_v7  ;;  %v1281_v63 = vld [vmem:[#allocation7 + $0x330] sm:$0xff] }
 0x3cb   :  { %2579 = vmatprep.subr.bf16.mxu0 %v2578_v2  ;;  %v2634_v1 = vpack.c.bf16 %v1282_v0, %v1281_v63  ;;  %v1390_v7 = vld [vmem:[#allocation7 + $0x370] sm:$0xff] }
 0x3cc   :  { %v2638_v42 = vpack.c.bf16 %v1390_v7, %v1389_v6 }
 0x3ce   :  { %2581 = vmatpush3.bf16.msra.mxu0 %v2578_v2 }
 0x3cf   :  { %2583 = vmatprep.subr.bf16.mxu0 %v2582_v8 }
 0x3d2   :  { %2585 = vmatpush3.bf16.msra.mxu0 %v2582_v8  ;;  %v1391_v8 = vld [vmem:[#allocation7 + $0x378] sm:$0xff] }
 0x3d3   :  { %2587 = vmatprep.subr.bf16.mxu0 %v2586_v10 }
 0x3d6   :  { %2589 = vmatpush3.bf16.msra.mxu0 %v2586_v10  ;;  %v2642_v10 = vpack.c.bf16 %v1392_v9, %v1391_v8  ;;  %v1990_v8 = vld [vmem:[#allocation7 + $0x410] ss:$0 sm:$0xff] }
 0x3d7   :  { %2591 = vmatprep.subr.bf16.mxu0 %v2590_v13 }
 0x3da   :  { %2593 = vmatpush3.bf16.msra.mxu0 %v2590_v13  ;;  %v2646_v13 = vpack.c.bf16 %v1384_v12, %v1383_v11 }
 0x3db   :  { %2595 = vmatprep.subr.bf16.mxu0 %v2594_v15 }
 0x3dd   :  { %2325 = vmatmul.mubr.msk.f32.vlgmr.msra.gmra.mrb[0].mxu0 %vm450_vm11, %v899_v19 }
 0x3de   :  { %2597 = vmatpush3.bf16.msra.mxu0 %v2594_v15  ;;  %2347 = vmatprep.mubr.msk.f32.mxu0 %vm450_vm11, %v993_v22  ;;  %v1385_v22 = vld [vmem:[#allocation7 + $0x358] sm:$0xff] }
 0x3df   :  { %2599 = vmatprep.subr.bf16.mxu0 %v2598_v18 }
 0x3e2   :  { %2601 = vmatpush3.bf16.msra.mxu0 %v2598_v18 }
 0x3e3   :  { %2603 = vmatprep.subr.bf16.mxu0 %v2602_v23 }
 0x3e6   :  { %2605 = vmatpush3.bf16.msra.mxu0 %v2602_v23  ;;  %v1386_v23 = vld [vmem:[#allocation7 + $0x360] sm:$0xff] }
 0x3e7   :  { %2607 = vmatprep.subr.bf16.mxu0 %v2606_v27  ;;  %v2650_v26 = vpack.c.bf16 %v1386_v23, %v1385_v22 }
 0x3ea   :  { %2609 = vmatpush3.bf16.msra.mxu0 %v2606_v27 }
 0x3eb   :  { %2611 = vmatprep.subr.bf16.mxu0 %v2610_v30 }
 0x3ee   :  { %2613 = vmatpush3.bf16.msra.mxu0 %v2610_v30 }
 0x3f1   :  { %2348 = vmatmul.mubr.msk.f32.vlgmr.msra.gmra.mrb[0].mxu0 %vm450_vm11, %v994_v31  ;;  %v2654_v31 = vpack.c.bf16 %v1558_v29, %v1557_v28 }
 0x45f   :  { %v2211_v25 = vpop.f32.mrb[6].mxu1 }
 0x460   :  { %v523_v41 = vpop.f32.mrb[7].mxu1 }
 0x4c4   :  { %v2349_v43 = vpop.f32.mrb[0].mxu0 }
 0x4c5   :  { %v2686_v45 = vadd.f32 %v2349_v43, %v2211_v25  ;;  %v1077_v46 = vpop.f32.mrb[1].mxu0  ;;  %v2662_v25 = vpack.c.bf16 %v1668_v39, %v1667_v38 }
 0x4c6   :  { %v2687_v47 = vadd.f32 %v1077_v46, %v523_v41  ;;  %v1670_v41 = vld [vmem:[#allocation7 + $0x3e8] sm:$0xff] }
 0x4c7   :  { %v1094_v48 = vadd.f32 %v2686_v45, %v1969_v44  ;;  %v1662_v45 = vld [vmem:[#allocation7 + $0x3b8] sm:$0xff] }
 0x4c8   :  { %v1093_v49 = vadd.f32 %v2687_v47, %v1969_v44  ;;  %v1661_v44 = vld [vmem:[#allocation7 + $0x3b0] sm:$0xff]  ;;  %v1983_v47 = vld [vmem:[#allocation7 + $0x3a8] ss:$0 sm:$0xff] }
 0x4c9   :  { %vm1096_vm12 = vcmp.gt.f32.partialorder %v1094_v48, 0.0  ;;  %v1098_v50 = vmul.f32 0.1, %v1094_v48  ;;  %v2670_v46 = vpack.c.bf16 %v1662_v45, %v1661_v44 }
 0x4ca   :  { %vm1095_vm13 = vcmp.gt.f32.partialorder %v1093_v49, 0.0  ;;  %v1097_v51 = vmul.f32 0.1, %v1093_v49 }
 0x4cb   :  { %v1100_v52 = vsel %vm1096_vm12, %v1094_v48, %v1098_v50 }
 0x4cc   :  { %1102 = vst.msk [vmem:[#allocation2 + $0x10] sm:$0xff] %vm160_vm5, %v1100_v52  ;;  %v1099_v53 = vsel %vm1095_vm13, %v1093_v49, %v1097_v51 }
 0x4cd   :  { %1101 = vst.msk [vmem:[#allocation2 + $0x8] sm:$0xff] %vm160_vm5, %v1099_v53 }
 0x4d3   :  { %v1110_v58 = vld [vmem:[#allocation2 + $0x10] sm:$0xff] }
 0x4d4   :  { %v1109_v56 = vld [vmem:[#allocation2 + $0x8] sm:$0xff]  ;;  %v1278_v5 = vld [vmem:[#allocation2 + $0x11] sm:$0xff] }
 0x4d5   :  { %2358 = vmatprep.mubr.msk.f32.mxu1 %vm160_vm5, %v1109_v56  ;;  %v1103_v61 = vld [vmem:[#allocation2 + $0x7] sm:$0xff]  ;;  %v1104_v2 = vld [vmem:[#allocation2 + $0xf] sm:$0xff] }
 0x4d6   :  { %2359 = vmatmul.mubr.msk.f32.vlgmr.msra.gmra.mrb[8].mxu1 %vm160_vm5, %v1110_v58  ;;  %v1277_v4 = vld [vmem:[#allocation2 + $0x9] sm:$0xff] }
 0x4d7   :  { %2625 = vmatpush3.bf16.msra.mxu1 %v2622_v40  ;;  %2369 = vmatprep.mubr.msk.f32.mxu1 %vm160_vm5, %v1103_v61  ;;  %v1669_v40 = vld [vmem:[#allocation7 + $0x3e0] sm:$0xff]  ;;  %v1835_v61 = vld [vmem:[#allocation7 + $0x3f0] sm:$0xff] }
 0x4d8   :  { %2627 = vmatprep.subr.bf16.mxu1 %v2626_v57  ;;  %v2666_v43 = vpack.c.bf16 %v1670_v41, %v1669_v40  ;;  %v1663_v56 = vld [vmem:[#allocation7 + $0x3c0] sm:$0xff] }
 0x4db   :  { %2629 = vmatpush3.bf16.msra.mxu1 %v2626_v57  ;;  %v1664_v57 = vld [vmem:[#allocation7 + $0x3c8] sm:$0xff] }
 0x4dc   :  { %2631 = vmatprep.subr.bf16.mxu1 %v2630_v62  ;;  %v2674_v59 = vpack.c.bf16 %v1664_v57, %v1663_v56 }
 0x4de   :  { %2370 = vmatmul.mubr.msk.f32.vlgmr.msra.gmra.mrb[8].mxu1 %vm160_vm5, %v1104_v2  ;;  %v1838_v2 = vld [vmem:[#allocation7 + $0x408] sm:$0xff] }
 0x4df   :  { %2633 = vmatpush3.bf16.msra.mxu1 %v2630_v62  ;;  %2380 = vmatprep.mubr.msk.f32.mxu1 %vm160_vm5, %v1277_v4  ;;  %v1836_v62 = vld [vmem:[#allocation7 + $0x3f8] sm:$0xff] }
 0x4e0   :  { %2635 = vmatprep.subr.bf16.mxu1 %v2634_v1  ;;  %v2678_v0 = vpack.c.bf16 %v1836_v62, %v1835_v61 }
 0x4e3   :  { %2637 = vmatpush3.bf16.msra.mxu1 %v2634_v1  ;;  %v1837_v1 = vld [vmem:[#allocation7 + $0x400] sm:$0xff] }
 0x4e4   :  { %2639 = vmatprep.subr.bf16.mxu1 %v2638_v42  ;;  %v2682_v4 = vpack.c.bf16 %v1838_v2, %v1837_v1 }
 0x4e6   :  { %2381 = vmatmul.mubr.msk.f32.vlgmr.msra.gmra.mrb[8].mxu1 %vm160_vm5, %v1278_v5 }
 0x4e7   :  { %2641 = vmatpush3.bf16.msra.mxu1 %v2638_v42 }
 0x4e8   :  { %2643 = vmatprep.subr.bf16.mxu1 %v2642_v10 }
 0x4eb   :  { %2645 = vmatpush3.bf16.msra.mxu1 %v2642_v10 }
 0x4ec   :  { %2647 = vmatprep.subr.bf16.mxu1 %v2646_v13 }
 0x5b9   :  { %v2382_v14 = vpop.f32.mrb[8].mxu1 }
 0x5ba   :  { %v1372_v15 = vadd.f32 %v2382_v14, %v1976_v3  ;;  %v1355_v16 = vpop.f32.mrb[9].mxu1 }
 0x5bb   :  { %v1371_v17 = vadd.f32 %v1976_v3, %v1355_v16 }
 0x5bc   :  { %vm1374_vm14 = vcmp.gt.f32.partialorder %v1372_v15, 0.0  ;;  %v1376_v18 = vmul.f32 0.1, %v1372_v15 }
 0x5bd   :  { %vm1373_vm15 = vcmp.gt.f32.partialorder %v1371_v17, 0.0  ;;  %v1375_v19 = vmul.f32 0.1, %v1371_v17 }
 0x5be   :  { %v1378_v20 = vsel %vm1374_vm14, %v1372_v15, %v1376_v18 }
 0x5bf   :  { %1380 = vst.msk [vmem:[#allocation2 + $0x10] sm:$0xff] %vm160_vm5, %v1378_v20  ;;  %v1377_v21 = vsel %vm1373_vm15, %v1371_v17, %v1375_v19 }
 0x5c0   :  { %1379 = vst.msk [vmem:[#allocation2 + $0x8] sm:$0xff] %vm160_vm5, %v1377_v21 }
 0x5c6   :  { %v1388_v27 = vld [vmem:[#allocation2 + $0x10] sm:$0xff] }
 0x5c7   :  { %v1387_v24 = vld [vmem:[#allocation2 + $0x8] sm:$0xff]  ;;  %v1556_v37 = vld [vmem:[#allocation2 + $0x11] sm:$0xff] }
 0x5c8   :  { %2391 = vmatprep.mubr.msk.f32.mxu1 %vm160_vm5, %v1387_v24  ;;  %v1381_v30 = vld [vmem:[#allocation2 + $0x7] sm:$0xff]  ;;  %v1382_v35 = vld [vmem:[#allocation2 + $0xf] sm:$0xff] }
 0x5c9   :  { %2392 = vmatmul.mubr.msk.f32.vlgmr.msra.gmra.mrb[10].mxu1 %vm160_vm5, %v1388_v27  ;;  %v1555_v36 = vld [vmem:[#allocation2 + $0x9] sm:$0xff] }
 0x5ca   :  { %2649 = vmatpush3.bf16.msra.mxu1 %v2646_v13  ;;  %2402 = vmatprep.mubr.msk.f32.mxu1 %vm160_vm5, %v1381_v30 }
 0x5cb   :  { %2651 = vmatprep.subr.bf16.mxu1 %v2650_v26 }
 0x5ce   :  { %2653 = vmatpush3.bf16.msra.mxu1 %v2650_v26 }
 0x5cf   :  { %2655 = vmatprep.subr.bf16.mxu1 %v2654_v31 }
 0x5d1   :  { %2403 = vmatmul.mubr.msk.f32.vlgmr.msra.gmra.mrb[10].mxu1 %vm160_vm5, %v1382_v35 }
 0x5d2   :  { %2657 = vmatpush3.bf16.msra.mxu1 %v2654_v31  ;;  %2413 = vmatprep.mubr.msk.f32.mxu1 %vm160_vm5, %v1555_v36 }
 0x5d3   :  { %2659 = vmatprep.subr.bf16.mxu1 %v2658_v34 }
 0x5d6   :  { %2661 = vmatpush3.bf16.msra.mxu1 %v2658_v34 }
 0x5d7   :  { %2663 = vmatprep.subr.bf16.mxu1 %v2662_v25 }
 0x5d9   :  { %2414 = vmatmul.mubr.msk.f32.vlgmr.msra.gmra.mrb[10].mxu1 %vm160_vm5, %v1556_v37 }
 0x5da   :  { %2665 = vmatpush3.bf16.msra.mxu1 %v2662_v25 }
 0x5db   :  { %2667 = vmatprep.subr.bf16.mxu1 %v2666_v43 }
 0x5de   :  { %2669 = vmatpush3.bf16.msra.mxu1 %v2666_v43 }
 0x5df   :  { %2671 = vmatprep.subr.bf16.mxu1 %v2670_v46 }
 0x6ac   :  { %v2415_v48 = vpop.f32.mrb[10].mxu1 }
 0x6ad   :  { %v1650_v49 = vadd.f32 %v2415_v48, %v1983_v47  ;;  %v1633_v50 = vpop.f32.mrb[11].mxu1 }
 0x6ae   :  { %v1649_v51 = vadd.f32 %v1983_v47, %v1633_v50 }
 0x6af   :  { %vm1652_vm0 = vcmp.gt.f32.partialorder %v1650_v49, 0.0  ;;  %v1654_v52 = vmul.f32 0.1, %v1650_v49 }
 0x6b0   :  { %vm1651_vm1 = vcmp.gt.f32.partialorder %v1649_v51, 0.0  ;;  %v1653_v53 = vmul.f32 0.1, %v1649_v51 }
 0x6b1   :  { %v1656_v54 = vsel %vm1652_vm0, %v1650_v49, %v1654_v52 }
 0x6b2   :  { %1658 = vst.msk [vmem:[#allocation2 + $0x10] sm:$0xff] %vm160_vm5, %v1656_v54  ;;  %v1655_v55 = vsel %vm1651_vm1, %v1649_v51, %v1653_v53 }
 0x6b3   :  { %1657 = vst.msk [vmem:[#allocation2 + $0x8] sm:$0xff] %vm160_vm5, %v1655_v55 }
 0x6b9   :  { %v1666_v60 = vld [vmem:[#allocation2 + $0x10] sm:$0xff] }
 0x6ba   :  { %v1665_v58 = vld [vmem:[#allocation2 + $0x8] sm:$0xff]  ;;  %v1834_v7 = vld [vmem:[#allocation2 + $0x11] sm:$0xff] }
 0x6bb   :  { %2424 = vmatprep.mubr.msk.f32.mxu1 %vm160_vm5, %v1665_v58  ;;  %v1659_v63 = vld [vmem:[#allocation2 + $0x7] sm:$0xff]  ;;  %v1660_v5 = vld [vmem:[#allocation2 + $0xf] sm:$0xff] }
 0x6bc   :  { %2425 = vmatmul.mubr.msk.f32.vlgmr.msra.gmra.mrb[12].mxu1 %vm160_vm5, %v1666_v60  ;;  %v1833_v6 = vld [vmem:[#allocation2 + $0x9] sm:$0xff] }
 0x6bd   :  { %2673 = vmatpush3.bf16.msra.mxu1 %v2670_v46  ;;  %2435 = vmatprep.mubr.msk.f32.mxu1 %vm160_vm5, %v1659_v63 }
 0x6be   :  { %2675 = vmatprep.subr.bf16.mxu1 %v2674_v59 }
 0x6c1   :  { %2677 = vmatpush3.bf16.msra.mxu1 %v2674_v59 }
 0x6c2   :  { %2679 = vmatprep.subr.bf16.mxu1 %v2678_v0 }
 0x6c4   :  { %2436 = vmatmul.mubr.msk.f32.vlgmr.msra.gmra.mrb[12].mxu1 %vm160_vm5, %v1660_v5 }
 0x6c5   :  { %2681 = vmatpush3.bf16.msra.mxu1 %v2678_v0  ;;  %2446 = vmatprep.mubr.msk.f32.mxu1 %vm160_vm5, %v1833_v6 }
 0x6c6   :  { %2683 = vmatprep.subr.bf16.mxu1 %v2682_v4 }
 0x6c9   :  { %2685 = vmatpush3.bf16.msra.mxu1 %v2682_v4 }
 0x6cc   :  { %2447 = vmatmul.mubr.msk.f32.vlgmr.msra.gmra.mrb[12].mxu1 %vm160_vm5, %v1834_v7 }
 0x79f   :  { %v2448_v42 = vpop.f32.mrb[12].mxu1 }
 0x7a0   :  { %v1928_v9 = vadd.f32 %v2448_v42, %v1990_v8  ;;  %v1911_v10 = vpop.f32.mrb[13].mxu1 }
 0x7a1   :  { %v1927_v11 = vadd.f32 %v1990_v8, %v1911_v10 }
 0x7a2   :  { %2729 = vtanh.f32 %v1928_v9 }
 0x7a3   :  { %2731 = vtanh.f32 %v1927_v11 }
 0x7ac   :  { %v2730_v12 = vpop.eup %2729 }
 0x7ad   :  { %v2732_v13 = vpop.eup %2731  ;;  %1932 = vst [vmem:[%s2938_s3 + $0x8] sm:$0xff] %v2730_v12 }
 0x7ae   :  { %1931 = vst [vmem:[%s2938_s3] sm:$0xff] %v2732_v13 }
 0x7af   :  { %1941 = vsyncpa [#allocation4], 1 }
 0x7b0   :  { %1942 = vsyncpa [#allocation8], 1 }
 0x7b1   :  { %1943 = vsyncpa [#allocation5], 1 }

</bundles_post_ra>
